<compile_context>
chip_gen: v5e
topology: v5e:2x2
jax: 0.10.0
libtpu: 0.0.40
codegen_flags: <defaults>
</compile_context>

<pallas_src>
import functools

import jax
import jax.numpy as jnp
import numpy as np
from jax.experimental import pallas as pl
from jax.experimental.pallas import tpu as pltpu


def cross_attention_kernel(q_ref, k_ref, v_ref,
                           wq_ref, bq_ref, wk_ref, bk_ref,
                           wv_ref, bv_ref, wo_ref, bo_ref,
                           out_ref, *scratch,
                           n_heads, head_size, cache_kv, k_transposed):
    H, D = n_heads, head_size
    bf16 = jnp.bfloat16
    f32 = jnp.float32

    def split_heads(x16):
        # (T, C) bf16 -> head-major (H, T, D) bf16.  Relayout is done on bf16
        # values (half the bytes through the lane shuffles / vector-store slot).
        return jnp.stack([x16[:, h * D:(h + 1) * D] for h in range(H)], axis=0)

    def split_heads_kt(x16):
        # (Tk, C) bf16 -> (H, D, Tk) bf16.  K is transposed ONCE when the
        # scratch cache is filled, so every q-tile's score matmul is a straight
        # batched (Tq, D) x (D, Tk) MXU matmul (no per-q-tile transpose).
        xt = x16.T                                      # (C, Tk)
        return jnp.stack([xt[h * D:(h + 1) * D, :] for h in range(H)], axis=0)

    def project_kv():
        kx = k_ref[0].astype(bf16)                      # (Tk, C)
        vx = v_ref[0].astype(bf16)
        kp = (jnp.dot(kx, wk_ref[...], preferred_element_type=f32)
              + bk_ref[...]).astype(bf16)
        vp = (jnp.dot(vx, wv_ref[...], preferred_element_type=f32)
              + bv_ref[...]).astype(bf16)
        kh = split_heads_kt(kp) if k_transposed else split_heads(kp)
        vh = split_heads(vp)
        return kh, vh

    if cache_kv:
        # K/V projections are shared by every q-tile of the same batch row:
        # compute them once (first q-tile) and cache head-major bf16 copies in
        # VMEM scratch.  Correct only because the q-tile axis is "arbitrary"
        # (sequential) -- see dimension_semantics in the wrapper.
        kh_scratch, vh_scratch = scratch

        @pl.when(pl.program_id(1) == 0)
        def _():
            kh0, vh0 = project_kv()
            kh_scratch[...] = kh0
            vh_scratch[...] = vh0

        kh = kh_scratch[...]
        vh = vh_scratch[...]
    else:
        # Recompute K/V per q-tile: lets the q-tile axis be "parallel"
        # (megacore utilization on v7x when B is too small to fill both cores).
        kh, vh = project_kv()

    # Q projection for this tile.  The attention scale is pre-folded into
    # wq / bq in the wrapper (constants), so no per-tile VPU multiply here.
    qx = q_ref[0].astype(bf16)                          # (Tq, C)
    qp = (jnp.dot(qx, wq_ref[...], preferred_element_type=f32)
          + bq_ref[...]).astype(bf16)
    qh = split_heads(qp)                                # (H, Tq, D) bf16

    # Head-batched scaled dot-product attention (MXU, f32 accumulation).
    if k_transposed:
        s = jnp.einsum('hqd,hdk->hqk', qh, kh, preferred_element_type=f32)
    else:
        s = jnp.einsum('hqd,hkd->hqk', qh, kh, preferred_element_type=f32)
    s = s - jnp.max(s, axis=-1, keepdims=True)
    e = jnp.exp(s)
    p = (e * pl.reciprocal(jnp.sum(e, axis=-1, keepdims=True),
                           approx=True)).astype(bf16)
    attn = jnp.einsum('hqk,hkd->hqd', p, vh, preferred_element_type=f32)

    # Merge heads (== permute(0,2,1,3).view(b,t,c)); cast to bf16 BEFORE the
    # lane concat so the relayout moves half the bytes, then one full-width
    # (contraction K = C) output-projection matmul.
    attn = attn.astype(bf16)
    merged = jnp.concatenate([attn[h] for h in range(H)], axis=-1)   # (Tq, C)
    out = jnp.dot(merged, wo_ref[...], preferred_element_type=f32) + bo_ref[...]
    out_ref[0] = out.astype(out_ref.dtype)


def _choose_q_tile(total, requested, multiple=8):
    """Largest divisor of `total` that is a multiple of `multiple` and <= requested.

    Falls back to the smallest qualifying divisor > requested, then to `total`.
    Prevents a silent full-Tq VMEM blow-up for awkward sequence lengths."""
    if total <= requested:
        return total
    divisors = [d for d in range(multiple, total, multiple) if total % d == 0]
    under = [d for d in divisors if d <= requested]
    if under:
        return max(under)
    if divisors:
        return min(divisors)
    # TODO(synk): pad Tq / masked final tile for lengths with no clean divisor.
    return total


def gpt2_cross_attention(q, k, v, params, *, n_heads, tq_tile=256):
    """Fused GPT2 cross-attention forward.

    tq_tile: requested query-tile length.  256 is a safe default for v7x
    (64 MiB VMEM); raise to 512 on v5e/v6e (128 MiB VMEM) to better amortize
    MXU push cadence and per-grid-step overhead.  q/k/v may be f32 or bf16 --
    pass bf16 if the surrounding model runs in bf16 (halves activation DMA).
    """
    B, Tq, C = q.shape
    _, Tk, _ = k.shape
    assert C % n_heads == 0
    D = C // n_heads
    scale = float(D) ** -0.5
    bf16 = jnp.bfloat16
    f32 = jnp.float32

    wq, bq, wk, bk, wv, bv, wo, bo = params
    # Fold the attention scale into the Q projection constants (host-side, free)
    # and cast weights to bf16 (2x MXU rate, half the weight DMA / VMEM).
    wq = (wq * scale).astype(bf16)
    bq = (bq * scale).astype(f32)
    wk, wv, wo = (w.astype(bf16) for w in (wk, wv, wo))
    bk, bv, bo = (b.astype(f32) for b in (bk, bv, bo))

    tq = _choose_q_tile(Tq, tq_tile, multiple=8)
    n_q_tiles = Tq // tq

    # Megacore: batch is the natural "parallel" axis.  With B == 1 the K/V
    # scratch cache would serialize the q-tile axis on one core; in that case
    # recompute K/V per q-tile and mark both axes "parallel".
    parallel_q = (B == 1 and n_q_tiles > 1)
    cache_kv = not parallel_q
    dims = ("parallel", "parallel") if parallel_q else ("parallel", "arbitrary")

    itemsize = q.dtype.itemsize
    flops = 2 * B * (2 * Tq * C * C + 2 * Tk * C * C + 2 * Tq * Tk * C)
    transcendentals = B * n_heads * Tq * Tk
    bytes_accessed = ((2 * B * Tq * C + 2 * B * Tk * C) * itemsize
                      + 4 * C * C * 2 + 4 * C * 4)
    cost = pl.CostEstimate(flops=flops, transcendentals=transcendentals,
                           bytes_accessed=bytes_accessed)

    # Explicit VMEM budget (default scoped limit is well below physical):
    # weights + double-buffered activation blocks + K/V scratch + softmax
    # intermediates, with 2x headroom, clamped to [32 MiB, 128 MiB].
    weight_bytes = 4 * C * C * 2 + 4 * C * 4
    act_bytes = 2 * (2 * tq * C + 2 * Tk * C) * itemsize
    scratch_bytes = 2 * n_heads * Tk * D * 2
    inter_bytes = 3 * n_heads * tq * Tk * 4 + 6 * tq * C * 4
    vmem_est = 2 * weight_bytes + act_bytes + scratch_bytes + inter_bytes
    vmem_limit = int(min(128 << 20, max(32 << 20, 2 * vmem_est)))

    def run(single_buffer_weights, k_transposed):
        # Constant-index weight / bias blocks are never re-fetched; Buffered(1)
        # also single-buffers them (saves 4*C*C*2 bytes of resident VMEM).
        wkw = dict(pipeline_mode=pl.Buffered(1)) if single_buffer_weights else {}
        w_spec = pl.BlockSpec((C, C), lambda b, i: (0, 0), **wkw)
        b_spec = pl.BlockSpec((1, C), lambda b, i: (0, 0), **wkw)
        q_spec = pl.BlockSpec((1, tq, C), lambda b, i: (b, i, 0))
        kv_spec = pl.BlockSpec((1, Tk, C), lambda b, i: (b, 0, 0))
        o_spec = pl.BlockSpec((1, tq, C), lambda b, i: (b, i, 0))

        scratch_shapes = []
        if cache_kv:
            k_shape = (n_heads, D, Tk) if k_transposed else (n_heads, Tk, D)
            scratch_shapes = [pltpu.VMEM(k_shape, bf16),        # cached K heads
                              pltpu.VMEM((n_heads, Tk, D), bf16)]  # cached V heads

        kernel = functools.partial(
            cross_attention_kernel, n_heads=n_heads, head_size=D,
            cache_kv=cache_kv, k_transposed=k_transposed)

        fn = pl.pallas_call(
            kernel,
            out_shape=jax.ShapeDtypeStruct((B, Tq, C), q.dtype),
            grid=(B, n_q_tiles),
            in_specs=[
                q_spec,                         # q
                kv_spec,                        # k
                kv_spec,                        # v
                w_spec, b_spec,                 # Wq (scale folded), bq
                w_spec, b_spec,                 # Wk, bk
                w_spec, b_spec,                 # Wv, bv
                w_spec, b_spec,                 # Wo, bo
            ],
            out_specs=o_spec,
            scratch_shapes=scratch_shapes,
            compiler_params=pltpu.CompilerParams(
                dimension_semantics=dims, vmem_limit_bytes=vmem_limit),
            cost_estimate=cost,
        )
        return fn(q, k, v, wq, bq, wk, bk, wv, bv, wo, bo)

    try:
        return jax.block_until_ready(run(True, True))
    except Exception:
        # Fall back to the previously-validated configuration if this
        # JAX/Mosaic build rejects pipeline_mode=pl.Buffered(1) or the packed
        # bf16 transpose used for the (H, D, Tk) K cache.  Semantics identical.
        return jax.block_until_ready(run(False, False))


def init_params(key, embed_dim):
    # Matches _init_weights: weight ~ N(0, 0.02), bias = 0.
    C = embed_dim
    keys = jax.random.split(key, 4)
    params = []
    for kk in keys:
        w_pt = 0.02 * jax.random.normal(kk, (C, C), dtype=jnp.float32)  # (out, in)
        params.append(w_pt.T)                                           # (in, out)
        params.append(jnp.zeros((1, C), dtype=jnp.float32))
    return tuple(params)


def reference_forward(q, k, v, params, *, n_heads):
    # Pure-JAX reference mirroring the PyTorch forward (dropout = identity)
    # with the same mixed precision as the kernel (bf16 matmul operands,
    # f32 accumulation / softmax) so the comparison is tight.
    wq, bq, wk, bk, wv, bv, wo, bo = params
    B, Tq, C = q.shape
    Tk = k.shape[1]
    D = C // n_heads
    scale = float(D) ** -0.5
    bf16 = jnp.bfloat16
    f32 = jnp.float32

    def proj(x, w, b):
        return jnp.dot(x.astype(bf16), w.astype(bf16),
                       preferred_element_type=f32) + b

    qp = proj(q, wq, bq) * scale
    kp = proj(k, wk, bk)
    vp = proj(v, wv, bv)
    qh = qp.reshape(B, Tq, n_heads, D).astype(bf16)
    kh = kp.reshape(B, Tk, n_heads, D).astype(bf16)
    vh = vp.reshape(B, Tk, n_heads, D).astype(bf16)
    s = jnp.einsum("bqhd,bkhd->bhqk", qh, kh, preferred_element_type=f32)
    p = jax.nn.softmax(s, axis=-1)
    a = jnp.einsum("bhqk,bkhd->bqhd", p.astype(bf16), vh,
                   preferred_element_type=f32)
    a = a.reshape(B, Tq, C).astype(bf16)
    return jnp.dot(a, wo.astype(bf16), preferred_element_type=f32) + bo


if __name__ == "__main__":
    # Small shapes: batch=2, query seq=8 (text), kv seq=16 (vision tokens),
    # embed_dim=32, num_heads=4 -> head_size=8.
    B, Tq, Tk, C, H = 2, 8, 16, 32, 4

    key = jax.random.PRNGKey(0)
    kq, kk, kv_, kp = jax.random.split(key, 4)
    q = jax.random.normal(kq, (B, Tq, C), dtype=jnp.float32)
    k = jax.random.normal(kk, (B, Tk, C), dtype=jnp.float32)
    v = jax.random.normal(kv_, (B, Tk, C), dtype=jnp.float32)

    params = init_params(kp, C)

    out = gpt2_cross_attention(q, k, v, params, n_heads=H)
    out = jax.block_until_ready(out)

    ref = reference_forward(q, k, v, params, n_heads=H)
    np.testing.assert_allclose(np.asarray(out), np.asarray(ref),
                               rtol=2e-2, atol=2e-3)
    print("KERNEL_OK")
</pallas_src>

<mosaic_0001>
module attributes {stable_mosaic.version = 11 : i64} {
  func.func @cross_attention_kernel(%arg0: i32, %arg1: i32, %arg2: memref<1x8x32xf32, #tpu.memory_space<vmem>>, %arg3: memref<1x16x32xf32, #tpu.memory_space<vmem>>, %arg4: memref<1x16x32xf32, #tpu.memory_space<vmem>>, %arg5: memref<32x32xbf16, #tpu.memory_space<vmem>>, %arg6: memref<1x32xf32, #tpu.memory_space<vmem>>, %arg7: memref<32x32xbf16, #tpu.memory_space<vmem>>, %arg8: memref<1x32xf32, #tpu.memory_space<vmem>>, %arg9: memref<32x32xbf16, #tpu.memory_space<vmem>>, %arg10: memref<1x32xf32, #tpu.memory_space<vmem>>, %arg11: memref<32x32xbf16, #tpu.memory_space<vmem>>, %arg12: memref<1x32xf32, #tpu.memory_space<vmem>>, %arg13: memref<1x8x32xf32, #tpu.memory_space<vmem>>, %arg14: memref<4x8x16xbf16, #tpu.memory_space<vmem>>, %arg15: memref<4x16x8xbf16, #tpu.memory_space<vmem>>) attributes {dimension_semantics = [#tpu.dimension_semantics<parallel>, #tpu.dimension_semantics<arbitrary>], iteration_bounds = array<i64: 2, 1>, scalar_prefetch = 0 : i64, scratch_operands = 2 : i64, tpu.core_type = #tpu.core_type<tc>, window_params = [{transform_indices = @transform_0, window_bounds = array<i64: 1, 8, 32>}, {transform_indices = @transform_1, window_bounds = array<i64: 1, 16, 32>}, {transform_indices = @transform_2, window_bounds = array<i64: 1, 16, 32>}, {pipeline_mode = #tpu.pipeline_mode<synchronous>, transform_indices = @transform_3, window_bounds = array<i64: 32, 32>}, {pipeline_mode = #tpu.pipeline_mode<synchronous>, transform_indices = @transform_4, window_bounds = array<i64: 1, 32>}, {pipeline_mode = #tpu.pipeline_mode<synchronous>, transform_indices = @transform_5, window_bounds = array<i64: 32, 32>}, {pipeline_mode = #tpu.pipeline_mode<synchronous>, transform_indices = @transform_6, window_bounds = array<i64: 1, 32>}, {pipeline_mode = #tpu.pipeline_mode<synchronous>, transform_indices = @transform_7, window_bounds = array<i64: 32, 32>}, {pipeline_mode = #tpu.pipeline_mode<synchronous>, transform_indices = @transform_8, window_bounds = array<i64: 1, 32>}, {pipeline_mode = #tpu.pipeline_mode<synchronous>, transform_indices = @transform_9, window_bounds = array<i64: 32, 32>}, {pipeline_mode = #tpu.pipeline_mode<synchronous>, transform_indices = @transform_10, window_bounds = array<i64: 1, 32>}, {transform_indices = @transform_11, window_bounds = array<i64: 1, 8, 32>}]} {
    %c0_i32 = arith.constant 0 : i32
    %0 = arith.cmpi eq, %arg1, %c0_i32 : i32
    %1 = arith.extui %0 : i1 to i32
    %c0_i32_0 = arith.constant 0 : i32
    %2 = arith.cmpi ne, %1, %c0_i32_0 : i32
    scf.if %2 {
      %c0_25 = arith.constant 0 : index
      %c0_26 = arith.constant 0 : index
      %c0_27 = arith.constant 0 : index
      %54 = vector.load %arg3[%c0_25, %c0_26, %c0_27] : memref<1x16x32xf32, #tpu.memory_space<vmem>>, vector<1x16x32xf32>
      %55 = vector.shape_cast %54 : vector<1x16x32xf32> to vector<16x32xf32>
      %56 = arith.truncf %55 : vector<16x32xf32> to vector<16x32xbf16>
      %c0_28 = arith.constant 0 : index
      %c0_29 = arith.constant 0 : index
      %c0_30 = arith.constant 0 : index
      %57 = vector.load %arg4[%c0_28, %c0_29, %c0_30] : memref<1x16x32xf32, #tpu.memory_space<vmem>>, vector<1x16x32xf32>
      %58 = vector.shape_cast %57 : vector<1x16x32xf32> to vector<16x32xf32>
      %59 = arith.truncf %58 : vector<16x32xf32> to vector<16x32xbf16>
      %c0_31 = arith.constant 0 : index
      %c0_32 = arith.constant 0 : index
      %60 = vector.load %arg7[%c0_31, %c0_32] : memref<32x32xbf16, #tpu.memory_space<vmem>>, vector<32x32xbf16>
      %cst_33 = arith.constant dense<0.000000e+00> : vector<16x32xf32>
      %61 = tpu.matmul %56, %60, %cst_33 {dimension_numbers = #tpu.dot_dimension_numbers<[1], [0], [0], [1], [0, 0, 1, 1], [], []>} : vector<16x32xbf16>, vector<32x32xbf16>, vector<16x32xf32> -> vector<16x32xf32>
      %c0_34 = arith.constant 0 : index
      %c0_35 = arith.constant 0 : index
      %62 = vector.load %arg8[%c0_34, %c0_35] : memref<1x32xf32, #tpu.memory_space<vmem>>, vector<1x32xf32>
      %63 = vector.broadcast %62 : vector<1x32xf32> to vector<16x32xf32>
      %64 = arith.addf %61, %63 : vector<16x32xf32>
      %65 = arith.truncf %64 : vector<16x32xf32> to vector<16x32xbf16>
      %c0_36 = arith.constant 0 : index
      %c0_37 = arith.constant 0 : index
      %66 = vector.load %arg9[%c0_36, %c0_37] : memref<32x32xbf16, #tpu.memory_space<vmem>>, vector<32x32xbf16>
      %cst_38 = arith.constant dense<0.000000e+00> : vector<16x32xf32>
      %67 = tpu.matmul %59, %66, %cst_38 {dimension_numbers = #tpu.dot_dimension_numbers<[1], [0], [0], [1], [0, 0, 1, 1], [], []>} : vector<16x32xbf16>, vector<32x32xbf16>, vector<16x32xf32> -> vector<16x32xf32>
      %c0_39 = arith.constant 0 : index
      %c0_40 = arith.constant 0 : index
      %68 = vector.load %arg10[%c0_39, %c0_40] : memref<1x32xf32, #tpu.memory_space<vmem>>, vector<1x32xf32>
      %69 = vector.broadcast %68 : vector<1x32xf32> to vector<16x32xf32>
      %70 = arith.addf %67, %69 : vector<16x32xf32>
      %71 = arith.truncf %70 : vector<16x32xf32> to vector<16x32xbf16>
      %72 = tpu.transpose %65, [1, 0] : vector<16x32xbf16> -> vector<32x16xbf16>
      %73 = vector.extract_strided_slice %72 {offsets = [0, 0], sizes = [8, 16], strides = [1, 1]} : vector<32x16xbf16> to vector<8x16xbf16>
      %74 = vector.extract_strided_slice %72 {offsets = [8, 0], sizes = [8, 16], strides = [1, 1]} : vector<32x16xbf16> to vector<8x16xbf16>
      %75 = vector.extract_strided_slice %72 {offsets = [16, 0], sizes = [8, 16], strides = [1, 1]} : vector<32x16xbf16> to vector<8x16xbf16>
      %76 = vector.extract_strided_slice %72 {offsets = [24, 0], sizes = [8, 16], strides = [1, 1]} : vector<32x16xbf16> to vector<8x16xbf16>
      %77 = vector.shape_cast %73 : vector<8x16xbf16> to vector<1x8x16xbf16>
      %78 = vector.shape_cast %74 : vector<8x16xbf16> to vector<1x8x16xbf16>
      %79 = vector.shape_cast %75 : vector<8x16xbf16> to vector<1x8x16xbf16>
      %80 = vector.shape_cast %76 : vector<8x16xbf16> to vector<1x8x16xbf16>
      %81 = tpu.concatenate %77, %78, %79, %80 in 0 : vector<1x8x16xbf16>, vector<1x8x16xbf16>, vector<1x8x16xbf16>, vector<1x8x16xbf16> -> vector<4x8x16xbf16>
      %82 = vector.extract_strided_slice %71 {offsets = [0, 0], sizes = [16, 8], strides = [1, 1]} : vector<16x32xbf16> to vector<16x8xbf16>
      %83 = vector.extract_strided_slice %71 {offsets = [0, 8], sizes = [16, 8], strides = [1, 1]} : vector<16x32xbf16> to vector<16x8xbf16>
      %84 = vector.extract_strided_slice %71 {offsets = [0, 16], sizes = [16, 8], strides = [1, 1]} : vector<16x32xbf16> to vector<16x8xbf16>
      %85 = vector.extract_strided_slice %71 {offsets = [0, 24], sizes = [16, 8], strides = [1, 1]} : vector<16x32xbf16> to vector<16x8xbf16>
      %86 = vector.shape_cast %82 : vector<16x8xbf16> to vector<1x16x8xbf16>
      %87 = vector.shape_cast %83 : vector<16x8xbf16> to vector<1x16x8xbf16>
      %88 = vector.shape_cast %84 : vector<16x8xbf16> to vector<1x16x8xbf16>
      %89 = vector.shape_cast %85 : vector<16x8xbf16> to vector<1x16x8xbf16>
      %90 = tpu.concatenate %86, %87, %88, %89 in 0 : vector<1x16x8xbf16>, vector<1x16x8xbf16>, vector<1x16x8xbf16>, vector<1x16x8xbf16> -> vector<4x16x8xbf16>
      %c0_41 = arith.constant 0 : index
      %c0_42 = arith.constant 0 : index
      %c0_43 = arith.constant 0 : index
      %91 = vector.load %arg14[%c0_41, %c0_42, %c0_43] : memref<4x8x16xbf16, #tpu.memory_space<vmem>>, vector<4x8x16xbf16>
      tpu.vector_store %arg14[%c0_41, %c0_42, %c0_43], %81 {strides = array<i32>} : memref<4x8x16xbf16, #tpu.memory_space<vmem>>, vector<4x8x16xbf16>,
      %c0_44 = arith.constant 0 : index
      %c0_45 = arith.constant 0 : index
      %c0_46 = arith.constant 0 : index
      %92 = vector.load %arg15[%c0_44, %c0_45, %c0_46] : memref<4x16x8xbf16, #tpu.memory_space<vmem>>, vector<4x16x8xbf16>
      tpu.vector_store %arg15[%c0_44, %c0_45, %c0_46], %90 {strides = array<i32>} : memref<4x16x8xbf16, #tpu.memory_space<vmem>>, vector<4x16x8xbf16>,
    } else {
    }
    %c0 = arith.constant 0 : index
    %c0_1 = arith.constant 0 : index
    %c0_2 = arith.constant 0 : index
    %3 = vector.load %arg14[%c0, %c0_1, %c0_2] : memref<4x8x16xbf16, #tpu.memory_space<vmem>>, vector<4x8x16xbf16>
    %c0_3 = arith.constant 0 : index
    %c0_4 = arith.constant 0 : index
    %c0_5 = arith.constant 0 : index
    %4 = vector.load %arg15[%c0_3, %c0_4, %c0_5] : memref<4x16x8xbf16, #tpu.memory_space<vmem>>, vector<4x16x8xbf16>
    %c0_6 = arith.constant 0 : index
    %c0_7 = arith.constant 0 : index
    %c0_8 = arith.constant 0 : index
    %5 = vector.load %arg2[%c0_6, %c0_7, %c0_8] : memref<1x8x32xf32, #tpu.memory_space<vmem>>, vector<1x8x32xf32>
    %6 = vector.shape_cast %5 : vector<1x8x32xf32> to vector<8x32xf32>
    %7 = arith.truncf %6 : vector<8x32xf32> to vector<8x32xbf16>
    %c0_9 = arith.constant 0 : index
    %c0_10 = arith.constant 0 : index
    %8 = vector.load %arg5[%c0_9, %c0_10] : memref<32x32xbf16, #tpu.memory_space<vmem>>, vector<32x32xbf16>
    %cst = arith.constant dense<0.000000e+00> : vector<8x32xf32>
    %9 = tpu.matmul %7, %8, %cst {dimension_numbers = #tpu.dot_dimension_numbers<[1], [0], [0], [1], [0, 0, 1, 1], [], []>} : vector<8x32xbf16>, vector<32x32xbf16>, vector<8x32xf32> -> vector<8x32xf32>
    %c0_11 = arith.constant 0 : index
    %c0_12 = arith.constant 0 : index
    %10 = vector.load %arg6[%c0_11, %c0_12] : memref<1x32xf32, #tpu.memory_space<vmem>>, vector<1x32xf32>
    %11 = vector.broadcast %10 : vector<1x32xf32> to vector<8x32xf32>
    %12 = arith.addf %9, %11 : vector<8x32xf32>
    %13 = arith.truncf %12 : vector<8x32xf32> to vector<8x32xbf16>
    %14 = vector.extract_strided_slice %13 {offsets = [0, 0], sizes = [8, 8], strides = [1, 1]} : vector<8x32xbf16> to vector<8x8xbf16>
    %15 = vector.extract_strided_slice %13 {offsets = [0, 8], sizes = [8, 8], strides = [1, 1]} : vector<8x32xbf16> to vector<8x8xbf16>
    %16 = vector.extract_strided_slice %13 {offsets = [0, 16], sizes = [8, 8], strides = [1, 1]} : vector<8x32xbf16> to vector<8x8xbf16>
    %17 = vector.extract_strided_slice %13 {offsets = [0, 24], sizes = [8, 8], strides = [1, 1]} : vector<8x32xbf16> to vector<8x8xbf16>
    %18 = vector.shape_cast %14 : vector<8x8xbf16> to vector<1x8x8xbf16>
    %19 = vector.shape_cast %15 : vector<8x8xbf16> to vector<1x8x8xbf16>
    %20 = vector.shape_cast %16 : vector<8x8xbf16> to vector<1x8x8xbf16>
    %21 = vector.shape_cast %17 : vector<8x8xbf16> to vector<1x8x8xbf16>
    %22 = tpu.concatenate %18, %19, %20, %21 in 0 : vector<1x8x8xbf16>, vector<1x8x8xbf16>, vector<1x8x8xbf16>, vector<1x8x8xbf16> -> vector<4x8x8xbf16>
    "tpu.trace_start"() <{level = 10 : i32, message = "hqd,hdk->hqk"}> : () -> ()
    %cst_13 = arith.constant dense<0.000000e+00> : vector<4x8x16xf32>
    %23 = tpu.matmul %22, %3, %cst_13 {dimension_numbers = #tpu.dot_dimension_numbers<[2], [1], [1], [2], [0, 0, 0, 1, 1, 2], [0], [0]>} : vector<4x8x8xbf16>, vector<4x8x16xbf16>, vector<4x8x16xf32> -> vector<4x8x16xf32>
    "tpu.trace_stop"() : () -> ()
    %cst_14 = arith.constant dense<0xFF800000> : vector<4x8xf32>
    %24 = vector.multi_reduction <maximumf>, %23, %cst_14 [2] : vector<4x8x16xf32> to vector<4x8xf32>
    %25 = vector.shape_cast %24 : vector<4x8xf32> to vector<4x8x1xf32>
    %26 = vector.broadcast %25 : vector<4x8x1xf32> to vector<4x8x16xf32>
    %27 = arith.subf %23, %26 : vector<4x8x16xf32>
    %28 = math.exp %27 : vector<4x8x16xf32>
    %cst_15 = arith.constant dense<0.000000e+00> : vector<4x8xf32>
    %29 = vector.multi_reduction <add>, %28, %cst_15 [2] : vector<4x8x16xf32> to vector<4x8xf32>
    %30 = vector.shape_cast %29 : vector<4x8xf32> to vector<4x8x1xf32>
    %31 = tpu.reciprocal %30 {approx = true} : vector<4x8x1xf32> -> vector<4x8x1xf32>
    %32 = vector.broadcast %31 : vector<4x8x1xf32> to vector<4x8x16xf32>
    %33 = arith.mulf %28, %32 : vector<4x8x16xf32>
    %34 = arith.truncf %33 : vector<4x8x16xf32> to vector<4x8x16xbf16>
    "tpu.trace_start"() <{level = 10 : i32, message = "hqk,hkd->hqd"}> : () -> ()
    %cst_16 = arith.constant dense<0.000000e+00> : vector<4x8x8xf32>
    %35 = tpu.matmul %34, %4, %cst_16 {dimension_numbers = #tpu.dot_dimension_numbers<[2], [1], [1], [2], [0, 0, 0, 1, 1, 2], [0], [0]>} : vector<4x8x16xbf16>, vector<4x16x8xbf16>, vector<4x8x8xf32> -> vector<4x8x8xf32>
    "tpu.trace_stop"() : () -> ()
    %36 = arith.truncf %35 : vector<4x8x8xf32> to vector<4x8x8xbf16>
    %37 = vector.extract_strided_slice %36 {offsets = [0, 0, 0], sizes = [1, 8, 8], strides = [1, 1, 1]} : vector<4x8x8xbf16> to vector<1x8x8xbf16>
    %38 = vector.shape_cast %37 : vector<1x8x8xbf16> to vector<8x8xbf16>
    %39 = vector.extract_strided_slice %36 {offsets = [1, 0, 0], sizes = [1, 8, 8], strides = [1, 1, 1]} : vector<4x8x8xbf16> to vector<1x8x8xbf16>
    %40 = vector.shape_cast %39 : vector<1x8x8xbf16> to vector<8x8xbf16>
    %41 = vector.extract_strided_slice %36 {offsets = [2, 0, 0], sizes = [1, 8, 8], strides = [1, 1, 1]} : vector<4x8x8xbf16> to vector<1x8x8xbf16>
    %42 = vector.shape_cast %41 : vector<1x8x8xbf16> to vector<8x8xbf16>
    %43 = vector.extract_strided_slice %36 {offsets = [3, 0, 0], sizes = [1, 8, 8], strides = [1, 1, 1]} : vector<4x8x8xbf16> to vector<1x8x8xbf16>
    %44 = vector.shape_cast %43 : vector<1x8x8xbf16> to vector<8x8xbf16>
    %45 = tpu.concatenate %38, %40, %42, %44 in 1 : vector<8x8xbf16>, vector<8x8xbf16>, vector<8x8xbf16>, vector<8x8xbf16> -> vector<8x32xbf16>
    %c0_17 = arith.constant 0 : index
    %c0_18 = arith.constant 0 : index
    %46 = vector.load %arg11[%c0_17, %c0_18] : memref<32x32xbf16, #tpu.memory_space<vmem>>, vector<32x32xbf16>
    %cst_19 = arith.constant dense<0.000000e+00> : vector<8x32xf32>
    %47 = tpu.matmul %45, %46, %cst_19 {dimension_numbers = #tpu.dot_dimension_numbers<[1], [0], [0], [1], [0, 0, 1, 1], [], []>} : vector<8x32xbf16>, vector<32x32xbf16>, vector<8x32xf32> -> vector<8x32xf32>
    %c0_20 = arith.constant 0 : index
    %c0_21 = arith.constant 0 : index
    %48 = vector.load %arg12[%c0_20, %c0_21] : memref<1x32xf32, #tpu.memory_space<vmem>>, vector<1x32xf32>
    %49 = vector.broadcast %48 : vector<1x32xf32> to vector<8x32xf32>
    %50 = arith.addf %47, %49 : vector<8x32xf32>
    %c0_22 = arith.constant 0 : index
    %c0_23 = arith.constant 0 : index
    %c0_24 = arith.constant 0 : index
    %51 = vector.load %arg13[%c0_22, %c0_23, %c0_24] : memref<1x8x32xf32, #tpu.memory_space<vmem>>, vector<1x8x32xf32>
    %52 = vector.shape_cast %51 : vector<1x8x32xf32> to vector<8x32xf32>
    %53 = vector.shape_cast %50 : vector<8x32xf32> to vector<1x8x32xf32>
    tpu.vector_store %arg13[%c0_22, %c0_23, %c0_24], %53 {strides = array<i32>} : memref<1x8x32xf32, #tpu.memory_space<vmem>>, vector<1x8x32xf32>,
    return
  }
  func.func @transform_0(%arg0: i32, %arg1: i32) -> (i32, i32, i32) {
    %c0_i32 = arith.constant 0 : i32
    %c0_i32_0 = arith.constant 0 : i32
    return %arg0, %arg1, %c0_i32 : i32, i32, i32
  }
  func.func @transform_1(%arg0: i32, %arg1: i32) -> (i32, i32, i32) {
    %c0_i32 = arith.constant 0 : i32
    %c0_i32_0 = arith.constant 0 : i32
    %c0_i32_1 = arith.constant 0 : i32
    return %arg0, %c0_i32, %c0_i32_0 : i32, i32, i32
  }
  func.func @transform_2(%arg0: i32, %arg1: i32) -> (i32, i32, i32) {
    %c0_i32 = arith.constant 0 : i32
    %c0_i32_0 = arith.constant 0 : i32
    %c0_i32_1 = arith.constant 0 : i32
    return %arg0, %c0_i32, %c0_i32_0 : i32, i32, i32
  }
  func.func @transform_3(%arg0: i32, %arg1: i32) -> (i32, i32) {
    %c0_i32 = arith.constant 0 : i32
    %c0_i32_0 = arith.constant 0 : i32
    %c0_i32_1 = arith.constant 0 : i32
    return %c0_i32, %c0_i32_0 : i32, i32
  }
  func.func @transform_4(%arg0: i32, %arg1: i32) -> (i32, i32) {
    %c0_i32 = arith.constant 0 : i32
    %c0_i32_0 = arith.constant 0 : i32
    %c0_i32_1 = arith.constant 0 : i32
    return %c0_i32, %c0_i32_0 : i32, i32
  }
  func.func @transform_5(%arg0: i32, %arg1: i32) -> (i32, i32) {
    %c0_i32 = arith.constant 0 : i32
    %c0_i32_0 = arith.constant 0 : i32
    %c0_i32_1 = arith.constant 0 : i32
    return %c0_i32, %c0_i32_0 : i32, i32
  }
  func.func @transform_6(%arg0: i32, %arg1: i32) -> (i32, i32) {
    %c0_i32 = arith.constant 0 : i32
    %c0_i32_0 = arith.constant 0 : i32
    %c0_i32_1 = arith.constant 0 : i32
    return %c0_i32, %c0_i32_0 : i32, i32
  }
  func.func @transform_7(%arg0: i32, %arg1: i32) -> (i32, i32) {
    %c0_i32 = arith.constant 0 : i32
    %c0_i32_0 = arith.constant 0 : i32
    %c0_i32_1 = arith.constant 0 : i32
    return %c0_i32, %c0_i32_0 : i32, i32
  }
  func.func @transform_8(%arg0: i32, %arg1: i32) -> (i32, i32) {
    %c0_i32 = arith.constant 0 : i32
    %c0_i32_0 = arith.constant 0 : i32
    %c0_i32_1 = arith.constant 0 : i32
    return %c0_i32, %c0_i32_0 : i32, i32
  }
  func.func @transform_9(%arg0: i32, %arg1: i32) -> (i32, i32) {
    %c0_i32 = arith.constant 0 : i32
    %c0_i32_0 = arith.constant 0 : i32
    %c0_i32_1 = arith.constant 0 : i32
    return %c0_i32, %c0_i32_0 : i32, i32
  }
  func.func @transform_10(%arg0: i32, %arg1: i32) -> (i32, i32) {
    %c0_i32 = arith.constant 0 : i32
    %c0_i32_0 = arith.constant 0 : i32
    %c0_i32_1 = arith.constant 0 : i32
    return %c0_i32, %c0_i32_0 : i32, i32
  }
  func.func @transform_11(%arg0: i32, %arg1: i32) -> (i32, i32, i32) {
    %c0_i32 = arith.constant 0 : i32
    %c0_i32_0 = arith.constant 0 : i32
    return %arg0, %arg1, %c0_i32 : i32, i32, i32
  }
}

module attributes {stable_mosaic.version = 11 : i64} {
  func.func @cross_attention_kernel(%arg0: i32, %arg1: i32, %arg2: memref<1x8x32xf32, #tpu.memory_space<vmem>>, %arg3: memref<1x16x32xf32, #tpu.memory_space<vmem>>, %arg4: memref<1x16x32xf32, #tpu.memory_space<vmem>>, %arg5: memref<32x32xbf16, #tpu.memory_space<vmem>>, %arg6: memref<1x32xf32, #tpu.memory_space<vmem>>, %arg7: memref<32x32xbf16, #tpu.memory_space<vmem>>, %arg8: memref<1x32xf32, #tpu.memory_space<vmem>>, %arg9: memref<32x32xbf16, #tpu.memory_space<vmem>>, %arg10: memref<1x32xf32, #tpu.memory_space<vmem>>, %arg11: memref<32x32xbf16, #tpu.memory_space<vmem>>, %arg12: memref<1x32xf32, #tpu.memory_space<vmem>>, %arg13: memref<1x8x32xf32, #tpu.memory_space<vmem>>, %arg14: memref<4x16x8xbf16, #tpu.memory_space<vmem>>, %arg15: memref<4x16x8xbf16, #tpu.memory_space<vmem>>) attributes {dimension_semantics = [#tpu.dimension_semantics<parallel>, #tpu.dimension_semantics<arbitrary>], iteration_bounds = array<i64: 2, 1>, scalar_prefetch = 0 : i64, scratch_operands = 2 : i64, tpu.core_type = #tpu.core_type<tc>, window_params = [{transform_indices = @transform_0, window_bounds = array<i64: 1, 8, 32>}, {transform_indices = @transform_1, window_bounds = array<i64: 1, 16, 32>}, {transform_indices = @transform_2, window_bounds = array<i64: 1, 16, 32>}, {pipeline_mode = #tpu.pipeline_mode<synchronous>, transform_indices = @transform_3, window_bounds = array<i64: 32, 32>}, {pipeline_mode = #tpu.pipeline_mode<synchronous>, transform_indices = @transform_4, window_bounds = array<i64: 1, 32>}, {pipeline_mode = #tpu.pipeline_mode<synchronous>, transform_indices = @transform_5, window_bounds = array<i64: 32, 32>}, {pipeline_mode = #tpu.pipeline_mode<synchronous>, transform_indices = @transform_6, window_bounds = array<i64: 1, 32>}, {pipeline_mode = #tpu.pipeline_mode<synchronous>, transform_indices = @transform_7, window_bounds = array<i64: 32, 32>}, {pipeline_mode = #tpu.pipeline_mode<synchronous>, transform_indices = @transform_8, window_bounds = array<i64: 1, 32>}, {pipeline_mode = #tpu.pipeline_mode<synchronous>, transform_indices = @transform_9, window_bounds = array<i64: 32, 32>}, {pipeline_mode = #tpu.pipeline_mode<synchronous>, transform_indices = @transform_10, window_bounds = array<i64: 1, 32>}, {transform_indices = @transform_11, window_bounds = array<i64: 1, 8, 32>}]} {
    %c0_i32 = arith.constant 0 : i32
    %0 = arith.cmpi eq, %arg1, %c0_i32 : i32
    %1 = arith.extui %0 : i1 to i32
    %c0_i32_0 = arith.constant 0 : i32
    %2 = arith.cmpi ne, %1, %c0_i32_0 : i32
    scf.if %2 {
      %c0_25 = arith.constant 0 : index
      %c0_26 = arith.constant 0 : index
      %c0_27 = arith.constant 0 : index
      %54 = vector.load %arg3[%c0_25, %c0_26, %c0_27] : memref<1x16x32xf32, #tpu.memory_space<vmem>>, vector<1x16x32xf32>
      %55 = vector.shape_cast %54 : vector<1x16x32xf32> to vector<16x32xf32>
      %56 = arith.truncf %55 : vector<16x32xf32> to vector<16x32xbf16>
      %c0_28 = arith.constant 0 : index
      %c0_29 = arith.constant 0 : index
      %c0_30 = arith.constant 0 : index
      %57 = vector.load %arg4[%c0_28, %c0_29, %c0_30] : memref<1x16x32xf32, #tpu.memory_space<vmem>>, vector<1x16x32xf32>
      %58 = vector.shape_cast %57 : vector<1x16x32xf32> to vector<16x32xf32>
      %59 = arith.truncf %58 : vector<16x32xf32> to vector<16x32xbf16>
      %c0_31 = arith.constant 0 : index
      %c0_32 = arith.constant 0 : index
      %60 = vector.load %arg7[%c0_31, %c0_32] : memref<32x32xbf16, #tpu.memory_space<vmem>>, vector<32x32xbf16>
      %cst_33 = arith.constant dense<0.000000e+00> : vector<16x32xf32>
      %61 = tpu.matmul %56, %60, %cst_33 {dimension_numbers = #tpu.dot_dimension_numbers<[1], [0], [0], [1], [0, 0, 1, 1], [], []>} : vector<16x32xbf16>, vector<32x32xbf16>, vector<16x32xf32> -> vector<16x32xf32>
      %c0_34 = arith.constant 0 : index
      %c0_35 = arith.constant 0 : index
      %62 = vector.load %arg8[%c0_34, %c0_35] : memref<1x32xf32, #tpu.memory_space<vmem>>, vector<1x32xf32>
      %63 = vector.broadcast %62 : vector<1x32xf32> to vector<16x32xf32>
      %64 = arith.addf %61, %63 : vector<16x32xf32>
      %65 = arith.truncf %64 : vector<16x32xf32> to vector<16x32xbf16>
      %c0_36 = arith.constant 0 : index
      %c0_37 = arith.constant 0 : index
      %66 = vector.load %arg9[%c0_36, %c0_37] : memref<32x32xbf16, #tpu.memory_space<vmem>>, vector<32x32xbf16>
      %cst_38 = arith.constant dense<0.000000e+00> : vector<16x32xf32>
      %67 = tpu.matmul %59, %66, %cst_38 {dimension_numbers = #tpu.dot_dimension_numbers<[1], [0], [0], [1], [0, 0, 1, 1], [], []>} : vector<16x32xbf16>, vector<32x32xbf16>, vector<16x32xf32> -> vector<16x32xf32>
      %c0_39 = arith.constant 0 : index
      %c0_40 = arith.constant 0 : index
      %68 = vector.load %arg10[%c0_39, %c0_40] : memref<1x32xf32, #tpu.memory_space<vmem>>, vector<1x32xf32>
      %69 = vector.broadcast %68 : vector<1x32xf32> to vector<16x32xf32>
      %70 = arith.addf %67, %69 : vector<16x32xf32>
      %71 = arith.truncf %70 : vector<16x32xf32> to vector<16x32xbf16>
      %72 = vector.extract_strided_slice %65 {offsets = [0, 0], sizes = [16, 8], strides = [1, 1]} : vector<16x32xbf16> to vector<16x8xbf16>
      %73 = vector.extract_strided_slice %65 {offsets = [0, 8], sizes = [16, 8], strides = [1, 1]} : vector<16x32xbf16> to vector<16x8xbf16>
      %74 = vector.extract_strided_slice %65 {offsets = [0, 16], sizes = [16, 8], strides = [1, 1]} : vector<16x32xbf16> to vector<16x8xbf16>
      %75 = vector.extract_strided_slice %65 {offsets = [0, 24], sizes = [16, 8], strides = [1, 1]} : vector<16x32xbf16> to vector<16x8xbf16>
      %76 = vector.shape_cast %72 : vector<16x8xbf16> to vector<1x16x8xbf16>
      %77 = vector.shape_cast %73 : vector<16x8xbf16> to vector<1x16x8xbf16>
      %78 = vector.shape_cast %74 : vector<16x8xbf16> to vector<1x16x8xbf16>
      %79 = vector.shape_cast %75 : vector<16x8xbf16> to vector<1x16x8xbf16>
      %80 = tpu.concatenate %76, %77, %78, %79 in 0 : vector<1x16x8xbf16>, vector<1x16x8xbf16>, vector<1x16x8xbf16>, vector<1x16x8xbf16> -> vector<4x16x8xbf16>
      %81 = vector.extract_strided_slice %71 {offsets = [0, 0], sizes = [16, 8], strides = [1, 1]} : vector<16x32xbf16> to vector<16x8xbf16>
      %82 = vector.extract_strided_slice %71 {offsets = [0, 8], sizes = [16, 8], strides = [1, 1]} : vector<16x32xbf16> to vector<16x8xbf16>
      %83 = vector.extract_strided_slice %71 {offsets = [0, 16], sizes = [16, 8], strides = [1, 1]} : vector<16x32xbf16> to vector<16x8xbf16>
      %84 = vector.extract_strided_slice %71 {offsets = [0, 24], sizes = [16, 8], strides = [1, 1]} : vector<16x32xbf16> to vector<16x8xbf16>
      %85 = vector.shape_cast %81 : vector<16x8xbf16> to vector<1x16x8xbf16>
      %86 = vector.shape_cast %82 : vector<16x8xbf16> to vector<1x16x8xbf16>
      %87 = vector.shape_cast %83 : vector<16x8xbf16> to vector<1x16x8xbf16>
      %88 = vector.shape_cast %84 : vector<16x8xbf16> to vector<1x16x8xbf16>
      %89 = tpu.concatenate %85, %86, %87, %88 in 0 : vector<1x16x8xbf16>, vector<1x16x8xbf16>, vector<1x16x8xbf16>, vector<1x16x8xbf16> -> vector<4x16x8xbf16>
      %c0_41 = arith.constant 0 : index
      %c0_42 = arith.constant 0 : index
      %c0_43 = arith.constant 0 : index
      %90 = vector.load %arg14[%c0_41, %c0_42, %c0_43] : memref<4x16x8xbf16, #tpu.memory_space<vmem>>, vector<4x16x8xbf16>
      tpu.vector_store %arg14[%c0_41, %c0_42, %c0_43], %80 {strides = array<i32>} : memref<4x16x8xbf16, #tpu.memory_space<vmem>>, vector<4x16x8xbf16>,
      %c0_44 = arith.constant 0 : index
      %c0_45 = arith.constant 0 : index
      %c0_46 = arith.constant 0 : index
      %91 = vector.load %arg15[%c0_44, %c0_45, %c0_46] : memref<4x16x8xbf16, #tpu.memory_space<vmem>>, vector<4x16x8xbf16>
      tpu.vector_store %arg15[%c0_44, %c0_45, %c0_46], %89 {strides = array<i32>} : memref<4x16x8xbf16, #tpu.memory_space<vmem>>, vector<4x16x8xbf16>,
    } else {
    }
    %c0 = arith.constant 0 : index
    %c0_1 = arith.constant 0 : index
    %c0_2 = arith.constant 0 : index
    %3 = vector.load %arg14[%c0, %c0_1, %c0_2] : memref<4x16x8xbf16, #tpu.memory_space<vmem>>, vector<4x16x8xbf16>
    %c0_3 = arith.constant 0 : index
    %c0_4 = arith.constant 0 : index
    %c0_5 = arith.constant 0 : index
    %4 = vector.load %arg15[%c0_3, %c0_4, %c0_5] : memref<4x16x8xbf16, #tpu.memory_space<vmem>>, vector<4x16x8xbf16>
    %c0_6 = arith.constant 0 : index
    %c0_7 = arith.constant 0 : index
    %c0_8 = arith.constant 0 : index
    %5 = vector.load %arg2[%c0_6, %c0_7, %c0_8] : memref<1x8x32xf32, #tpu.memory_space<vmem>>, vector<1x8x32xf32>
    %6 = vector.shape_cast %5 : vector<1x8x32xf32> to vector<8x32xf32>
    %7 = arith.truncf %6 : vector<8x32xf32> to vector<8x32xbf16>
    %c0_9 = arith.constant 0 : index
    %c0_10 = arith.constant 0 : index
    %8 = vector.load %arg5[%c0_9, %c0_10] : memref<32x32xbf16, #tpu.memory_space<vmem>>, vector<32x32xbf16>
    %cst = arith.constant dense<0.000000e+00> : vector<8x32xf32>
    %9 = tpu.matmul %7, %8, %cst {dimension_numbers = #tpu.dot_dimension_numbers<[1], [0], [0], [1], [0, 0, 1, 1], [], []>} : vector<8x32xbf16>, vector<32x32xbf16>, vector<8x32xf32> -> vector<8x32xf32>
    %c0_11 = arith.constant 0 : index
    %c0_12 = arith.constant 0 : index
    %10 = vector.load %arg6[%c0_11, %c0_12] : memref<1x32xf32, #tpu.memory_space<vmem>>, vector<1x32xf32>
    %11 = vector.broadcast %10 : vector<1x32xf32> to vector<8x32xf32>
    %12 = arith.addf %9, %11 : vector<8x32xf32>
    %13 = arith.truncf %12 : vector<8x32xf32> to vector<8x32xbf16>
    %14 = vector.extract_strided_slice %13 {offsets = [0, 0], sizes = [8, 8], strides = [1, 1]} : vector<8x32xbf16> to vector<8x8xbf16>
    %15 = vector.extract_strided_slice %13 {offsets = [0, 8], sizes = [8, 8], strides = [1, 1]} : vector<8x32xbf16> to vector<8x8xbf16>
    %16 = vector.extract_strided_slice %13 {offsets = [0, 16], sizes = [8, 8], strides = [1, 1]} : vector<8x32xbf16> to vector<8x8xbf16>
    %17 = vector.extract_strided_slice %13 {offsets = [0, 24], sizes = [8, 8], strides = [1, 1]} : vector<8x32xbf16> to vector<8x8xbf16>
    %18 = vector.shape_cast %14 : vector<8x8xbf16> to vector<1x8x8xbf16>
    %19 = vector.shape_cast %15 : vector<8x8xbf16> to vector<1x8x8xbf16>
    %20 = vector.shape_cast %16 : vector<8x8xbf16> to vector<1x8x8xbf16>
    %21 = vector.shape_cast %17 : vector<8x8xbf16> to vector<1x8x8xbf16>
    %22 = tpu.concatenate %18, %19, %20, %21 in 0 : vector<1x8x8xbf16>, vector<1x8x8xbf16>, vector<1x8x8xbf16>, vector<1x8x8xbf16> -> vector<4x8x8xbf16>
    "tpu.trace_start"() <{level = 10 : i32, message = "hqd,hkd->hqk"}> : () -> ()
    %cst_13 = arith.constant dense<0.000000e+00> : vector<4x8x16xf32>
    %23 = tpu.matmul %22, %3, %cst_13 {dimension_numbers = #tpu.dot_dimension_numbers<[2], [2], [1], [1], [0, 0, 0, 1, 1, 1], [0], [0]>} : vector<4x8x8xbf16>, vector<4x16x8xbf16>, vector<4x8x16xf32> -> vector<4x8x16xf32>
    "tpu.trace_stop"() : () -> ()
    %cst_14 = arith.constant dense<0xFF800000> : vector<4x8xf32>
    %24 = vector.multi_reduction <maximumf>, %23, %cst_14 [2] : vector<4x8x16xf32> to vector<4x8xf32>
    %25 = vector.shape_cast %24 : vector<4x8xf32> to vector<4x8x1xf32>
    %26 = vector.broadcast %25 : vector<4x8x1xf32> to vector<4x8x16xf32>
    %27 = arith.subf %23, %26 : vector<4x8x16xf32>
    %28 = math.exp %27 : vector<4x8x16xf32>
    %cst_15 = arith.constant dense<0.000000e+00> : vector<4x8xf32>
    %29 = vector.multi_reduction <add>, %28, %cst_15 [2] : vector<4x8x16xf32> to vector<4x8xf32>
    %30 = vector.shape_cast %29 : vector<4x8xf32> to vector<4x8x1xf32>
    %31 = tpu.reciprocal %30 {approx = true} : vector<4x8x1xf32> -> vector<4x8x1xf32>
    %32 = vector.broadcast %31 : vector<4x8x1xf32> to vector<4x8x16xf32>
    %33 = arith.mulf %28, %32 : vector<4x8x16xf32>
    %34 = arith.truncf %33 : vector<4x8x16xf32> to vector<4x8x16xbf16>
    "tpu.trace_start"() <{level = 10 : i32, message = "hqk,hkd->hqd"}> : () -> ()
    %cst_16 = arith.constant dense<0.000000e+00> : vector<4x8x8xf32>
    %35 = tpu.matmul %34, %4, %cst_16 {dimension_numbers = #tpu.dot_dimension_numbers<[2], [1], [1], [2], [0, 0, 0, 1, 1, 2], [0], [0]>} : vector<4x8x16xbf16>, vector<4x16x8xbf16>, vector<4x8x8xf32> -> vector<4x8x8xf32>
    "tpu.trace_stop"() : () -> ()
    %36 = arith.truncf %35 : vector<4x8x8xf32> to vector<4x8x8xbf16>
    %37 = vector.extract_strided_slice %36 {offsets = [0, 0, 0], sizes = [1, 8, 8], strides = [1, 1, 1]} : vector<4x8x8xbf16> to vector<1x8x8xbf16>
    %38 = vector.shape_cast %37 : vector<1x8x8xbf16> to vector<8x8xbf16>
    %39 = vector.extract_strided_slice %36 {offsets = [1, 0, 0], sizes = [1, 8, 8], strides = [1, 1, 1]} : vector<4x8x8xbf16> to vector<1x8x8xbf16>
    %40 = vector.shape_cast %39 : vector<1x8x8xbf16> to vector<8x8xbf16>
    %41 = vector.extract_strided_slice %36 {offsets = [2, 0, 0], sizes = [1, 8, 8], strides = [1, 1, 1]} : vector<4x8x8xbf16> to vector<1x8x8xbf16>
    %42 = vector.shape_cast %41 : vector<1x8x8xbf16> to vector<8x8xbf16>
    %43 = vector.extract_strided_slice %36 {offsets = [3, 0, 0], sizes = [1, 8, 8], strides = [1, 1, 1]} : vector<4x8x8xbf16> to vector<1x8x8xbf16>
    %44 = vector.shape_cast %43 : vector<1x8x8xbf16> to vector<8x8xbf16>
    %45 = tpu.concatenate %38, %40, %42, %44 in 1 : vector<8x8xbf16>, vector<8x8xbf16>, vector<8x8xbf16>, vector<8x8xbf16> -> vector<8x32xbf16>
    %c0_17 = arith.constant 0 : index
    %c0_18 = arith.constant 0 : index
    %46 = vector.load %arg11[%c0_17, %c0_18] : memref<32x32xbf16, #tpu.memory_space<vmem>>, vector<32x32xbf16>
    %cst_19 = arith.constant dense<0.000000e+00> : vector<8x32xf32>
    %47 = tpu.matmul %45, %46, %cst_19 {dimension_numbers = #tpu.dot_dimension_numbers<[1], [0], [0], [1], [0, 0, 1, 1], [], []>} : vector<8x32xbf16>, vector<32x32xbf16>, vector<8x32xf32> -> vector<8x32xf32>
    %c0_20 = arith.constant 0 : index
    %c0_21 = arith.constant 0 : index
    %48 = vector.load %arg12[%c0_20, %c0_21] : memref<1x32xf32, #tpu.memory_space<vmem>>, vector<1x32xf32>
    %49 = vector.broadcast %48 : vector<1x32xf32> to vector<8x32xf32>
    %50 = arith.addf %47, %49 : vector<8x32xf32>
    %c0_22 = arith.constant 0 : index
    %c0_23 = arith.constant 0 : index
    %c0_24 = arith.constant 0 : index
    %51 = vector.load %arg13[%c0_22, %c0_23, %c0_24] : memref<1x8x32xf32, #tpu.memory_space<vmem>>, vector<1x8x32xf32>
    %52 = vector.shape_cast %51 : vector<1x8x32xf32> to vector<8x32xf32>
    %53 = vector.shape_cast %50 : vector<8x32xf32> to vector<1x8x32xf32>
    tpu.vector_store %arg13[%c0_22, %c0_23, %c0_24], %53 {strides = array<i32>} : memref<1x8x32xf32, #tpu.memory_space<vmem>>, vector<1x8x32xf32>,
    return
  }
  func.func @transform_0(%arg0: i32, %arg1: i32) -> (i32, i32, i32) {
    %c0_i32 = arith.constant 0 : i32
    %c0_i32_0 = arith.constant 0 : i32
    return %arg0, %arg1, %c0_i32 : i32, i32, i32
  }
  func.func @transform_1(%arg0: i32, %arg1: i32) -> (i32, i32, i32) {
    %c0_i32 = arith.constant 0 : i32
    %c0_i32_0 = arith.constant 0 : i32
    %c0_i32_1 = arith.constant 0 : i32
    return %arg0, %c0_i32, %c0_i32_0 : i32, i32, i32
  }
  func.func @transform_2(%arg0: i32, %arg1: i32) -> (i32, i32, i32) {
    %c0_i32 = arith.constant 0 : i32
    %c0_i32_0 = arith.constant 0 : i32
    %c0_i32_1 = arith.constant 0 : i32
    return %arg0, %c0_i32, %c0_i32_0 : i32, i32, i32
  }
  func.func @transform_3(%arg0: i32, %arg1: i32) -> (i32, i32) {
    %c0_i32 = arith.constant 0 : i32
    %c0_i32_0 = arith.constant 0 : i32
    %c0_i32_1 = arith.constant 0 : i32
    return %c0_i32, %c0_i32_0 : i32, i32
  }
  func.func @transform_4(%arg0: i32, %arg1: i32) -> (i32, i32) {
    %c0_i32 = arith.constant 0 : i32
    %c0_i32_0 = arith.constant 0 : i32
    %c0_i32_1 = arith.constant 0 : i32
    return %c0_i32, %c0_i32_0 : i32, i32
  }
  func.func @transform_5(%arg0: i32, %arg1: i32) -> (i32, i32) {
    %c0_i32 = arith.constant 0 : i32
    %c0_i32_0 = arith.constant 0 : i32
    %c0_i32_1 = arith.constant 0 : i32
    return %c0_i32, %c0_i32_0 : i32, i32
  }
  func.func @transform_6(%arg0: i32, %arg1: i32) -> (i32, i32) {
    %c0_i32 = arith.constant 0 : i32
    %c0_i32_0 = arith.constant 0 : i32
    %c0_i32_1 = arith.constant 0 : i32
    return %c0_i32, %c0_i32_0 : i32, i32
  }
  func.func @transform_7(%arg0: i32, %arg1: i32) -> (i32, i32) {
    %c0_i32 = arith.constant 0 : i32
    %c0_i32_0 = arith.constant 0 : i32
    %c0_i32_1 = arith.constant 0 : i32
    return %c0_i32, %c0_i32_0 : i32, i32
  }
  func.func @transform_8(%arg0: i32, %arg1: i32) -> (i32, i32) {
    %c0_i32 = arith.constant 0 : i32
    %c0_i32_0 = arith.constant 0 : i32
    %c0_i32_1 = arith.constant 0 : i32
    return %c0_i32, %c0_i32_0 : i32, i32
  }
  func.func @transform_9(%arg0: i32, %arg1: i32) -> (i32, i32) {
    %c0_i32 = arith.constant 0 : i32
    %c0_i32_0 = arith.constant 0 : i32
    %c0_i32_1 = arith.constant 0 : i32
    return %c0_i32, %c0_i32_0 : i32, i32
  }
  func.func @transform_10(%arg0: i32, %arg1: i32) -> (i32, i32) {
    %c0_i32 = arith.constant 0 : i32
    %c0_i32_0 = arith.constant 0 : i32
    %c0_i32_1 = arith.constant 0 : i32
    return %c0_i32, %c0_i32_0 : i32, i32
  }
  func.func @transform_11(%arg0: i32, %arg1: i32) -> (i32, i32, i32) {
    %c0_i32 = arith.constant 0 : i32
    %c0_i32_0 = arith.constant 0 : i32
    return %arg0, %arg1, %c0_i32 : i32, i32, i32
  }
}

</mosaic_0001>

<bundles_post_ra>
// kernel: tpu_custom_call.1
= control target key start
LH: loop header
LB: loop body
LE: loop exit
PB: predicated region body
PF: predicated region fallthrough
CT: control target
= control target key end

     0   :  { %s2138_s0 = inlined_call_operand.hbm [shape: f32[2,8,32], index: 0, kind: input, shape index: {}]   ;;  %s2139_s1 = inlined_call_operand.hbm [shape: f32[2,16,32], index: 1, kind: input, shape index: {}]   ;;  %s2140_s2 = inlined_call_operand.hbm [shape: f32[2,16,32], index: 2, kind: input, shape index: {}]   ;;  %s2141_s3 = inlined_call_operand.hbm [shape: bf16[32,32], index: 3, kind: input, shape index: {}]   ;;  %s2142_s4 = inlined_call_operand.vmem [shape: f32[1,32], index: 4, kind: input, shape index: {}]   ;;  %s2143_s5 = inlined_call_operand.hbm [shape: bf16[32,32], index: 5, kind: input, shape index: {}]   ;;  %s2144_s6 = inlined_call_operand.vmem [shape: f32[1,32], index: 6, kind: input, shape index: {}]   ;;  %s2145_s7 = inlined_call_operand.hbm [shape: bf16[32,32], index: 7, kind: input, shape index: {}]   ;;  %s2146_s8 = inlined_call_operand.vmem [shape: f32[1,32], index: 8, kind: input, shape index: {}]   ;;  %s2147_s9 = inlined_call_operand.hbm [shape: bf16[32,32], index: 9, kind: input, shape index: {}]   ;;  %s2148_s10 = inlined_call_operand.vmem [shape: f32[1,32], index: 10, kind: input, shape index: {}]   ;;  %s2149_s11 = inlined_call_operand.hbm [shape: f32[2,8,32], index: 11, kind: output, shape index: {}]  }
   0x1   :  { %2163 = sst [smem:[#allocation30_spill]] %s2139_s1 }
   0x2   :  { %2164 = sst [smem:[#allocation31_spill]] %s2141_s3 }
   0x3   :  { %2165 = sst [smem:[#allocation32_spill]] %s2142_s4 }
   0x4   :  { %2166 = sst [smem:[#allocation33_spill]] %s2144_s6 }
   0x5   :  { %2167 = sst [smem:[#allocation34_spill]] %s2145_s7 }
   0x6   :  { %2168 = sst [smem:[#allocation35_spill]] %s2146_s8 }
   0x7   :  { %2169 = sst [smem:[#allocation36_spill]] %s2148_s10 }
   0x8   :  { %2170 = sst [smem:[#allocation37_spill]] %s2149_s11 }
   0x9   :  { %16 = vsyncpa [#allocation5], 0 }
   0xa   :  { %18 = vsyncpa [#allocation5 + $0x1], 0 }
   0xb   :  { %19 = vsyncpa [#allocation8], 0 }
   0xc   :  { %21 = vsyncpa [#allocation8 + $0x1], 0 }
   0xd   :  { %22 = vsyncpa [#allocation11], 0 }
   0xe   :  { %23 = vsyncpa [#allocation14], 0 }
   0xf   :  { %24 = vsyncpa [#allocation6], 0 }
  0x10   :  { %26 = vsyncpa [#allocation6 + $0x1], 0  ;;  %s1855_s17 = smov 0   ;;  %s1857_s18 = smov 0  }
  0x11   :  { %s1859_s19 = smov 0   ;;  %s1861_s20 = smov 0  }
  0x12   :  { %s1863_s21 = smov 0   ;;  %s1865_s22 = smov 0  }
  0x13 LB: > { %2171 = sst [smem:[#allocation22_spill]] %s1759_s17  ;;  %s1886_s23 = sadd.s32 4294967295, %s1779_s22   ;;  %s1779_s22 = sphi %s1865_s22, %s32_s22   ;;  %s1775_s21 = sphi %s1863_s21, %s2208_s21   ;;  %s1771_s20 = sphi %s1861_s20, %s2207_s20   ;;  %s1767_s19 = sphi %s1859_s19, %s2203_s19   ;;  %s1763_s18 = sphi %s1857_s18, %s2206_s18   ;;  %s1759_s17 = sphi %s1855_s17, %s2205_s17  }
  0x14   : > { %2172 = sst [smem:[#allocation23_spill]] %s1767_s19  ;;  %s1229_s24 = sadd.s32 4294967294, %s1779_s22  }
  0x15   : > { %2173 = sst [smem:[#allocation24_spill]] %s1771_s20  ;;  %p66_p0 = scmp.ne.s32.totalorder %s1763_s18, %s1759_s17 }
  0x16   : > { %2174 = sst [smem:[#allocation25_spill]] %s1779_s22  ;;  %p67_p1 = scmp.eq.s32.totalorder %s1886_s23, 0 }
  0x17   : > { %p312_p2 = scmp.eq.s32.totalorder %s1886_s23, 1  ;;  %p318_p3 = scmp.eq.s32.totalorder %s1229_s24, 1 }
  0x18   : > { %p1895_p4 = por %p67_p1, %p66_p0  ;;  %p1230_p5 = scmp.ge.s32.totalorder %s1779_s22, 1 }
  0x19   : > { %p1900_p6 = por %p318_p3, %p66_p0  ;;  %p325_p7 = scmp.lt.s32.totalorder %s1779_s22, 3 }
  0x1a   : > { %s2178_s3 = sld [smem:[#allocation31_spill]]  ;;  %s1781_s12 = smov [#allocation10]  }
  0x1b   : > { %s2176_s26 = scalar_select %p1900_p6, 1, 0 }
  0x1c   : > { %p1908_p8 = pnand %p1230_p5, %p325_p7  ;;  %s338_s13 = sshll.u32 %s1781_s12, 4  ;;  %s339_s13 = int_to_ptr.vmem [resolvable:$true] %s338_s13 }
  0x1d   : > { %2177 = sst [smem:[#allocation26_spill]] %s2176_s26  ;;  %s2150_s27 = smov 64  }
  0x1e   : > { %p1355_p9 = pneg %p1908_p8  ;;  %s2181_s7 = sld [smem:[#allocation34_spill]] }
  0x1f   : > { %s2152_s28 = smov 4   ;;  %s1784_s12 = smov [#allocation13]  }
  0x20   : > { %s336_s29 = sshll.u32 %s2178_s3, 4  ;;  %p1916_p10 = pnand %p1355_p9, %p67_p1  ;;  %s337_s29 = int_to_ptr.hbm [resolvable:$true] %s336_s29 }
  0x21   : > { %s372_s3 = sshll.u32 %s1784_s12, 4  ;;  %s44_s15 = sadd.s32 1, %s1775_s21  ;;  %s373_s3 = int_to_ptr.vmem [resolvable:$true] %s372_s3 }
  0x22   : > { %1358 = dma.hbm_to_vmem [thread:$0]  (!%p1916_p10), %s337_s29, 256, %s339_s13, [#allocation11], %s2150_s27, %s2150_s27, %s2152_s28  }
  0x23   : > { %s53_s16 = sadd.s32 1, %s1767_s19  ;;  %p46_p12 = scmp.ge.s32.totalorder %s44_s15, 2 }
  0x24   : > { %s370_s24 = sshll.u32 %s2181_s7, 4  ;;  %p60_p13 = scmp.ne.s32.totalorder %s1767_s19, %s1763_s18  ;;  %s371_s24 = int_to_ptr.hbm [resolvable:$true] %s370_s24 }
  0x25   : > { %1364 = dma.hbm_to_vmem [thread:$0]  (!%p1916_p10), %s371_s24, 256, %s373_s3, [#allocation14], %s2150_s27, %s2150_s27, %s2152_s28  }
  0x26   : > { %p61_p0 = scmp.eq.s32.totalorder %s1779_s22, 0  ;;  %p1386_p3 = scmp.lt.s32.totalorder %s1779_s22, 2 }
  0x27   : > { %s2210_s15 = smov (%p46_p12, %s44_s15), 0  ;;  %p1944_p7 = por %p312_p2, %p60_p13 }
  0x28   : > { %2182 = sst [smem:[#allocation27_spill]] %s2210_s15  ;;  %p62_p5 = por %p61_p0, %p60_p13 }
  0x29   : > { %s2183_s29 = scalar_select %p1944_p7, 1, 0 }
  0x2a   : > { %s48_s13 = ssub.s32 %s1775_s21, %s2210_s15  ;;  %s1951_s12 = sand.u32 1, %s1767_s19  }
  0x2b   : > { %2184 = sst [smem:[#allocation28_spill]] %s2183_s29  ;;  %p51_p9 = scmp.eq.s32.totalorder %s48_s13, 0 }
  0x2c   : > { %p1953_p11 = pnand %p1386_p3, %p62_p5  ;;  %s426_s24 = sand.u32 1, %s1779_s22  }
  0x2d   : > { %s1238_s27 = sshll.u32 %s1951_s12, 4  ;;  %s1317_s7 = sshll.u32 %s1775_s21, 4 }
  0x2e   : > { %s1960_s28 = scalar_select %p51_p9, %s1767_s19, %s53_s16  }
  0x2f   : > { %s2187_s1 = sld [smem:[#allocation30_spill]]  ;;  %s430_s29 = scalar_lea.vmem [#allocation7], %s1238_s27 }
  0x30   : > { %2186 = sst [smem:[#allocation29_spill]] %s1960_s28  ;;  %s438_s15 = sshll.u32 %s430_s29, 4  ;;  %s439_s15 = int_to_ptr.vmem [resolvable:$true] %s438_s15 }
  0x31   : > { %s1966_s13 = scalar_lea.sflag [#allocation8], %s426_s24  ;;  %s1785_s20 = smov 128  }
  0x32   : > { %s1786_s8 = smov 8   ;;  %s457_s17 = scalar_lea.hbm %s2140_s2, %s1317_s7 }
  0x33   : > { %s452_s26 = scalar_lea.vmem [#allocation9], %s1238_s27  ;;  %s458_s29 = sshll.u32 %s457_s17, 4  ;;  %s459_s29 = int_to_ptr.hbm [resolvable:$true] %s458_s29 }
  0x34   : > { %s353_s19 = sshll.u32 %s2143_s5, 4  ;;  %s1787_s22 = smov [#allocation12]   ;;  %s354_s19 = int_to_ptr.hbm [resolvable:$true] %s353_s19 }
  0x35   : > { %s435_s10 = scalar_lea.hbm %s2187_s1, %s1317_s7  ;;  %s355_s6 = sshll.u32 %s1787_s22, 4  ;;  %s356_s6 = int_to_ptr.vmem [resolvable:$true] %s355_s6 }
  0x36   : > { %s436_s11 = sshll.u32 %s435_s10, 4  ;;  %s460_s10 = sshll.u32 %s452_s26, 4  ;;  %s437_s11 = int_to_ptr.hbm [resolvable:$true] %s436_s11  ;;  %s461_s10 = int_to_ptr.vmem [resolvable:$true] %s460_s10 }
  0x37   : > { %1374 = dma.hbm_to_vmem [thread:$0]  (!%p1953_p11), %s437_s11, 256, %s439_s15, %s1966_s13, %s1785_s20, %s1785_s20, %s1786_s8  }
  0x38   : > { %s387_s15 = sshll.u32 %s2147_s9, 4  ;;  %s2188_s7 = smov 4   ;;  %s388_s15 = int_to_ptr.hbm [resolvable:$true] %s387_s15 }
  0x39   : > { %s2189_s27 = smov 64   ;;  %s1788_s1 = smov [#allocation15]  }
  0x3a   : > { %1361 = dma.hbm_to_vmem [thread:$0]  (!%p1916_p10), %s354_s19, 256, %s356_s6, [#allocation11], %s2189_s27, %s2189_s27, %s2188_s7  }
  0x3b   : > { %s389_s28 = sshll.u32 %s1788_s1, 4  ;;  %s1236_s16 = sshll.u32 %s1951_s12, 3  ;;  %s390_s28 = int_to_ptr.vmem [resolvable:$true] %s389_s28 }
  0x3c   : > { %1367 = dma.hbm_to_vmem [thread:$0]  (!%p1916_p10), %s388_s15, 256, %s390_s28, [#allocation14], %s2189_s27, %s2189_s27, %s2188_s7  }
  0x3d   : > { %s1237_s4 = sshll.u32 %s1775_s21, 3  ;;  %s410_s22 = scalar_lea.vmem [#allocation4], %s1236_s16 }
  0x3e   : > { %s419_s17 = sshll.u32 %s410_s22, 4  ;;  %s415_s11 = scalar_lea.hbm %s2138_s0, %s1237_s4  ;;  %s420_s17 = int_to_ptr.vmem [resolvable:$true] %s419_s17 }
  0x3f   : > { %s417_s6 = sshll.u32 %s415_s11, 4  ;;  %s407_s19 = scalar_lea.sflag [#allocation5], %s1951_s12  ;;  %s418_s6 = int_to_ptr.hbm [resolvable:$true] %s417_s6 }
  0x40   : > { %1371 = dma.hbm_to_vmem [thread:$0]  (!%p1953_p11), %s418_s6, 128, %s420_s17, %s407_s19  }
  0x41   : > { %1377 = dma.hbm_to_vmem [thread:$0]  (!%p1953_p11), %s459_s29, 256, %s461_s10, %s1966_s13, %s1785_s20, %s1785_s20, %s1786_s8  }
  0x42   : > { %472 = sbr.rel (%p1908_p8) target bundleno = 1256 (0x4e8), region = 64  ;;  %s2010_s14 = sand.u32 (!%p1908_p8), 1, %s1763_s18  }
  0x43   : > { %s1245_s15 = sshll.u32 (!%p1908_p8), %s2010_s14, 3  ;;  %s475_s7 = scalar_lea.sflag (!%p1908_p8), [#allocation5], %s2010_s14 }
  0x44   : > { %s478_s12 = scalar_lea.vmem (!%p1908_p8), [#allocation4], %s1245_s15 }
  0x47   : > { %1738 = dma.done.wait (%p1895_p4), %s475_s7, 128  }
  0x48   : > { %1740 = vsyncadd (%p1895_p4), %s475_s7, 4294967168  ;;  %s484_s8 = sand.u32 1, %s1886_s23   ;;  %s1246_s20 = sshll.u32 %s2010_s14, 4 }
  0x49   : > { %s485_s30 = scalar_lea.sflag [#allocation8], %s484_s8  ;;  %s488_s3 = scalar_lea.vmem [#allocation7], %s1246_s20 }
  0x4a   : > { %1742 = dma.done.wait (%p1895_p4), %s485_s30, 512  }
  0x4b   : > { %1744 = vsyncadd (%p1895_p4), %s485_s30, 4294966784  ;;  %s2026_s13 = scalar_lea.vmem [#allocation9], %s1246_s20 }
  0x4c   : > { %1746 = dma.done.wait (%p67_p1), [#allocation11], 512  }
  0x4d   : > { %1748 = vsyncadd (%p67_p1), [#allocation11], 4294966784 }
  0x4e   : > { %1750 = dma.done.wait (%p67_p1), [#allocation14], 512  }
  0x4f   : > { %1752 = vsyncadd (%p67_p1), [#allocation14], 4294966784  ;;  %v1320_v0 = vld [vmem:[#allocation12 + $0x8] sm:$0xff]  ;;  %v1319_v1 = vld [vmem:[#allocation12] sm:$0xff]  ;;  %vm599_vm0 = vcmask 261120   ;;  %s2190_s10 = sld [smem:[#allocation32_spill]] }
  0x50   : > { %v573_v2 = vld [vmem:[%s488_s3] sm:$0xff]  ;;  %v574_v3 = vld [vmem:[%s488_s3 + $0x8] sm:$0xff]  ;;  %609 = vmatpush.bf16.msra.mxu0 %v1320_v0  ;;  %s2191_s1 = sld [smem:[#allocation33_spill]]  ;;  %s1789_s28 = smov 112   ;;  %vm699_vm1 = vcmask 125952   ;;  %vm776_vm2 = vcmask 1043456  }
  0x51   : > { %v1328_v4 = vld [vmem:[#allocation10 + $0x8] sm:$0xff]  ;;  %v1327_v5 = vld [vmem:[#allocation10] sm:$0xff]  ;;  %v725_v6 = vld [vmem:[%s478_s12] sm:$0xff]  ;;  %v575_v7 = vpack.c.bf16 %v574_v3, %v573_v2  ;;  %s1790_s16 = smov 104   ;;  %s1791_s4 = smov 120   ;;  %vm772_vm3 = vcmask 64512  }
  0x52   : > { %757 = vmatpush.bf16.msra.mxu2 %v1328_v4  ;;  %v726_v8 = vpack.c.bf16 %v725_v6, %v725_v6  ;;  %v1322_v20 = vld [vmem:[#allocation13 + $0x8] sm:$0xff]  ;;  %v1321_v21 = vld [vmem:[#allocation13] sm:$0xff]  ;;  %s2192_s26 = sld [smem:[#allocation35_spill]]  ;;  %vm704_vm4 = vcmask 60416   ;;  %vm850_vm5 = vcmask 130048   ;;  %s1792_s24 = smov 16  }
  0x53   : > { %647 = vmatpush.bf16.msra.mxu1 %v1322_v20  ;;  %v576_v22 = vld [vmem:[%s2026_s13] sm:$0xff]  ;;  %v577_v23 = vld [vmem:[%s2026_s13 + $0x8] sm:$0xff]  ;;  %s1793_s11 = smov 8   ;;  %s2193_s6 = sld [smem:[#allocation24_spill]]  ;;  %vm1011_vm6 = vcmask 195584  }
  0x54   : > { %610 = vmatpush.bf16.msra.mxu0 %v1319_v1  ;;  %v578_v24 = vpack.c.bf16 %v577_v23, %v576_v22  ;;  %s1794_s19 = smov 24   ;;  %s2194_s20 = sld [smem:[#allocation37_spill]] }
  0x55   : > { %v1456_v10 = vld [vmem:[%s2190_s10] ss:$0 sm:$0xff]  ;;  %s2197_s10 = sld [smem:[#allocation36_spill]]  ;;  %s567_s29 = scalar_lea.vmem [#allocation16], %s1245_s15 }
  0x56   : > { %758 = vmatpush.bf16.msra.mxu2 %v1327_v5  ;;  %v1455_v11 = vld [vmem:[%s2191_s1] ss:$0 sm:$0xff]  ;;  %s1064_s27 = sshll.u32 %s567_s29, 4  ;;  %s1065_s27 = int_to_ptr.vmem [resolvable:$true] %s1064_s27 }
  0x57   : > { %1261 = vmatmul.msk.bf16.vlgmr.msra.gmra.mxu0 %vm599_vm0, %v575_v7  ;;  %648 = vmatpush.bf16.msra.mxu1 %v1321_v21 }
  0x58   : > { %v1457_v39 = vld [vmem:[%s2192_s26] ss:$0 sm:$0xff] }
  0x59   : > { %1279 = vmatmul.msk.bf16.vlgmr.msra.gmra.mxu2 %vm599_vm0, %v726_v8  ;;  %s1314_s7 = sshll.u32 %s2193_s6, 3 }
  0x5a   : > { %1270 = vmatmul.msk.bf16.vlgmr.msra.gmra.mxu1 %vm599_vm0, %v578_v24  ;;  %s2195_s30 = smov %s2194_s20  ;;  %s1062_s13 = scalar_lea.hbm %s2194_s20, %s1314_s7 }
  0x5b   : > { %s1066_s1 = sshll.u32 %s1062_s13, 4  ;;  %s1705_s15 = scalar_lea.hbm %s2195_s30, 16  ;;  %s1067_s1 = int_to_ptr.hbm [resolvable:$true] %s1066_s1 }
  0xd4   : > { %v612_v9 = vpop.f32.mrf.mxu0 }
  0xd5   : > { %v613_v15 = vadd.f32 %v1455_v11, %v612_v9 }
  0xd7   : > { %v650_v40 = vpop.f32.mrf.mxu1 }
  0xd8   : > { %v651_v41 = vadd.f32 %v1457_v39, %v650_v40 }
  0xda   : > { %v655_v42 = vpack.c.bf16 %v651_v41, %v651_v41 }
  0xdc   : > { %v760_v12 = vpop.f32.mrf.mxu2  ;;  %v614_v13 = vpop.f32.mrf.mxu0  ;;  %705 = vst.msk [vmem:[#allocation3] sm:$0xf] %vm704_vm4, %v655_v42  ;;  %681 = vrot.lane.b32.xlu2 %v655_v42, %s1791_s4 }
  0xdd   : > { %v761_v14 = vadd.f32 %v1456_v10, %v760_v12  ;;  %v615_v16 = vadd.f32 %v1455_v11, %v614_v13 }
  0xdf   : > { %v764_v17 = vpack.c.bf16 %v761_v14, %v761_v14  ;;  %v617_v18 = vpack.c.bf16 %v615_v16, %v613_v15  ;;  %v652_v43 = vpop.f32.mrf.mxu1 }
  0xe0   : > { %v653_v44 = vadd.f32 %v1457_v39, %v652_v43 }
  0xe1   : > { %768 = vrot.lane.b32.xlu1 %v764_v17, %s1789_s28  ;;  %657 = vxpose.xlu0.c.b16.start.end [1/1] (short) (narrow) %v617_v18, 32 }
  0xe2   : > { %v656_v45 = vpack.c.bf16 %v653_v44, %v653_v44 }
  0xe4   : > { %v762_v19 = vpop.f32.mrf.mxu2  ;;  %706 = vst.msk [vmem:[#allocation3 + $0x4] sm:$0xf] %vm704_vm4, %v656_v45  ;;  %683 = vrot.lane.b32.xlu2 %v656_v45, %s1791_s4 }
  0xe9   : > { %770 = vrot.lane.b32.xlu1 %v764_v17, %s1790_s16 }
  0xeb   : > { %v1323_v47 = vld [vmem:[#allocation3] sm:$0xff] }
  0xec   : > { %915 = vmatpush.bf16.msrb.mxu2 %v1323_v47 }
  0xf1   : > { %687 = vrot.lane.b32.xlu1 %v655_v42, %s1789_s28 }
  0xf9   : > { %689 = vrot.lane.b32.xlu1 %v656_v45, %s1789_s28  ;;  %s1051_s28 = scalar_lea.sflag [#allocation6], %s2010_s14 }
 0x136   : > { %v682_v57 = vpop.permute.xlu2 %681 }
 0x137   : > { %707 = vst.msk [vmem:[#allocation3 + $0x8] sm:$0xf] %vm704_vm4, %v682_v57 }
 0x13e   : > { %v684_v58 = vpop.permute.xlu2 %683 }
 0x13f   : > { %708 = vst.msk [vmem:[#allocation3 + $0xc] sm:$0xf] %vm704_vm4, %v684_v58  ;;  %v1330_v58 = vld [vmem:[#allocation15 + $0x8] sm:$0xff] }
 0x140   : > { %1042 = vmatpush.bf16.msra.mxu2 %v1330_v58 }
 0x146   : > { %v1324_v62 = vld [vmem:[#allocation3 + $0x8] sm:$0xff] }
 0x153   : > { %v769_v33 = vpop.permute.xlu1 %768 }
 0x15b   : > { %v771_v38 = vpop.permute.xlu1 %770 }
 0x15f   : > { %766 = vrot.lane.b32.xlu0 %v764_v17, %s1791_s4 }
 0x163   : > { %v688_v59 = vpop.permute.xlu1 %687 }
 0x164   : > { %709 = vst.msk [vmem:[#allocation3 + $0x10] sm:$0xf] %vm704_vm4, %v688_v59  ;;  %v1329_v59 = vld [vmem:[#allocation15] sm:$0xff] }
 0x165   : > { %1043 = vmatpush.bf16.msra.mxu2 %v1329_v59 }
 0x16b   : > { %v690_v63 = vpop.permute.xlu1 %689 }
 0x16c   : > { %710 = vst.msk [vmem:[#allocation3 + $0x14] sm:$0xf] %vm704_vm4, %v690_v63 }
 0x173   : > { %v1325_v1 = vld [vmem:[#allocation3 + $0x10] sm:$0xff] }
 0x18d   : > { %v665_v25 = vpop.trf.xlu0 }
 0x18e   : > { %v674_v26 = vrot.slane %v665_v25, 4  ;;  %700 = vst.msk [vmem:[#allocation2] sm:$0xf] %vm699_vm1, %v665_v25 }
 0x190   : > { %701 = vst.msk [vmem:[#allocation2 + $0x4] sm:$0xf] %vm699_vm1, %v674_v26 }
 0x195   : > { %v713_v27 = vld [vmem:[#allocation2] sm:$0xf] }
 0x196   : > { %v778_v28 = vsel %vm776_vm2, %v713_v27, 0 }
 0x197   : > { %787 = vmatpush.bf16.msra.mxu3 %v778_v28  ;;  %v714_v29 = vld [vmem:[#allocation2 + $0x4] sm:$0xf] }
 0x198   : > { %v797_v30 = vsel %vm776_vm2, %v714_v29, 0 }
 0x19a   : > { %1280 = vmatmul.msk.bf16.vlgmr.msra.gmra.mxu3 %vm772_vm3, %v764_v17 }
 0x19b   : > { %806 = vmatpush.bf16.msrb.mxu3 %v797_v30 }
 0x19d   : > { %v666_v31 = vpop.trf.xlu0 }
 0x19e   : > { %v677_v32 = vrot.slane %v666_v31, 4  ;;  %702 = vst.msk [vmem:[#allocation2 + $0x8] sm:$0xf] %vm699_vm1, %v666_v31 }
 0x19f   : > { %937 = vmatpush.bf16.msra.mxu3 %v1324_v62 }
 0x1a0   : > { %703 = vst.msk [vmem:[#allocation2 + $0xc] sm:$0xf] %vm699_vm1, %v677_v32 }
 0x1a5   : > { %v715_v34 = vld [vmem:[#allocation2 + $0x8] sm:$0xf] }
 0x1a6   : > { %v816_v35 = vsel %vm776_vm2, %v715_v34, 0 }
 0x1a7   : > { %825 = vmatpush.bf16.msrb.mxu0 %v816_v35  ;;  %v716_v36 = vld [vmem:[#allocation2 + $0xc] sm:$0xf] }
 0x1a8   : > { %v835_v37 = vsel %vm776_vm2, %v716_v36, 0 }
 0x1a9   : > { %844 = vmatpush.bf16.msrb.mxu1 %v835_v37 }
 0x1aa   : > { %1282 = vmatmul.msk.bf16.vlgmr.msrb.gmra.mxu0 %vm772_vm3, %v769_v33 }
 0x1ab   : > { %959 = vmatpush.bf16.msra.mxu0 %v1325_v1 }
 0x1ac   : > { %1283 = vmatmul.msk.bf16.vlgmr.msrb.gmra.mxu1 %vm772_vm3, %v771_v38 }
 0x1d1   : > { %v767_v46 = vpop.permute.xlu0 %766 }
 0x1d2   : > { %1281 = vmatmul.msk.bf16.vlgmr.msrb.gmra.mxu3 %vm772_vm3, %v767_v46 }
 0x21d   : > { %v789_v48 = vpop.f32.mrf.mxu3 }
 0x21e   : > { %v851_v49 = vsel %vm850_vm5, %v789_v48, -inf }
 0x21f   : > { %852 = vmax.xlane.f32.xlu2 %v851_v49 }
 0x225   : > { %v791_v50 = vpop.f32.mrf.mxu3 }
 0x227   : > { %v827_v51 = vpop.f32.mrf.mxu0 }
 0x228   : > { %v857_v52 = vsel %vm850_vm5, %v827_v51, -inf }
 0x229   : > { %v846_v53 = vpop.f32.mrf.mxu1  ;;  %858 = vmax.xlane.f32.xlu2 %v857_v52 }
 0x22a   : > { %v860_v54 = vsel %vm850_vm5, %v846_v53, -inf }
 0x22b   : > { %861 = vmax.xlane.f32.xlu1 %v860_v54 }
 0x22f   : > { %v829_v55 = vpop.f32.mrf.mxu0 }
 0x231   : > { %v848_v56 = vpop.f32.mrf.mxu1 }
 0x244   : > { %693 = vrot.lane.b32.xlu1 %v655_v42, %s1790_s16 }
 0x255   : > { %v808_v60 = vpop.f32.mrf.mxu3 }
 0x256   : > { %v854_v61 = vsel %vm850_vm5, %v808_v60, -inf }
 0x257   : > { %855 = vmax.xlane.f32.xlu2 %v854_v61 }
 0x25d   : > { %v810_v0 = vpop.f32.mrf.mxu3 }
 0x26f   : > { %695 = vrot.lane.b32.xlu2 %v656_v45, %s1790_s16  ;;  %s1699_s16 = sshra.s32 %s1067_s1, 4  ;;  %s1700_s16 = int_to_ptr.hbm [resolvable:$true] %s1699_s16 }
 0x270   : > { %s1701_s4 = scalar_lea.hbm %s1700_s16, 8  ;;  %p1706_p8 = scmp.lt.s32.totalorder %s1700_s16, %s2195_s30 }
 0x271   : > { %p1702_p1 = scmp.ne.s32.totalorder %s1700_s16, %s1701_s4  ;;  %p1707_p10 = scmp.lt.s32.totalorder %s1705_s15, %s1701_s4 }
 0x273   : > { %p1703_p2 = pnand %p1702_p1, %p1944_p7  ;;  %p1708_p11 = por %p1707_p10, %p1706_p8 }
 0x275   : > { %p1704_p4 = pneg %p1703_p2 }
 0x277   : > { %p1709_p12 = pnand %p1708_p11, %p1704_p4 }
 0x292   : > { %v853_v2 = vpop.xlane.xlu2 %852 }
 0x293   : > { %v863_v3 = vsub.f32 %v789_v48, %v853_v2 }
 0x295   : > { %v867_v4 = vmul.f32 1.442695, %v863_v3  ;;  %v1458_v3 = vld [vmem:[%s2197_s10] ss:$0 sm:$0xff] }
 0x297   : > { %1459 = vpow2.f32 %v867_v4 }
 0x29c   : > { %v859_v5 = vpop.xlane.xlu2 %858 }
 0x29d   : > { %v1460_v6 = vpop.eup %1459  ;;  %v865_v7 = vsub.f32 %v827_v51, %v859_v5 }
 0x29e   : > { %v875_v8 = vsel %vm850_vm5, %v1460_v6, 0.0  ;;  %v862_v12 = vpop.xlane.xlu1 %861 }
 0x29f   : > { %v871_v9 = vmul.f32 1.442695, %v865_v7  ;;  %876 = vadd.xlane.f32.xlu0 %v875_v8  ;;  %v866_v16 = vsub.f32 %v846_v53, %v862_v12 }
 0x2a1   : > { %1461 = vpow2.f32 %v871_v9  ;;  %v873_v18 = vmul.f32 1.442695, %v866_v16 }
 0x2a7   : > { %v1462_v10 = vpop.eup %1461 }
 0x2a8   : > { %v881_v11 = vsel %vm850_vm5, %v1462_v10, 0.0 }
 0x2a9   : > { %882 = vadd.xlane.f32.xlu1 %v881_v11 }
 0x2b6   : > { %v694_v13 = vpop.permute.xlu1 %693 }
 0x2b7   : > { %711 = vst.msk [vmem:[#allocation3 + $0x18] sm:$0xf] %vm704_vm4, %v694_v13 }
 0x2ca   : > { %v856_v14 = vpop.xlane.xlu2 %855 }
 0x2cb   : > { %v864_v15 = vsub.f32 %v808_v60, %v856_v14 }
 0x2cd   : > { %v869_v17 = vmul.f32 1.442695, %v864_v15 }
 0x2cf   : > { %1463 = vpow2.f32 %v869_v17 }
 0x2d0   : > { %1465 = vpow2.f32 %v873_v18 }
 0x2d2   : > { %v696_v19 = vpop.permute.xlu2 %695 }
 0x2d3   : > { %712 = vst.msk [vmem:[#allocation3 + $0x1c] sm:$0xf] %vm704_vm4, %v696_v19 }
 0x2d5   : > { %v1464_v20 = vpop.eup %1463 }
 0x2d6   : > { %v878_v21 = vsel %vm850_vm5, %v1464_v20, 0.0  ;;  %v1466_v23 = vpop.eup %1465 }
 0x2d7   : > { %879 = vadd.xlane.f32.xlu2 %v878_v21  ;;  %v884_v24 = vsel %vm850_vm5, %v1466_v23, 0.0 }
 0x2da   : > { %v1326_v22 = vld [vmem:[#allocation3 + $0x18] sm:$0xff] }
 0x2db   : > { %981 = vmatpush.bf16.msra.mxu1 %v1326_v22 }
 0x2df   : > { %885 = vadd.xlane.f32.xlu2 %v884_v24 }
 0x312   : > { %v877_v25 = vpop.xlane.xlu0 %876 }
 0x313   : > { %1467 = vrcp.f32 %v877_v25 }
 0x319   : > { %v1468_v26 = vpop.eup %1467 }
 0x31a   : > { %v891_v27 = vmul.f32 %v1468_v26, %v1460_v6 }
 0x31c   : > { %v895_v28 = vpack.c.bf16 %v891_v27, %v891_v27  ;;  %v883_v29 = vpop.xlane.xlu1 %882 }
 0x31d   : > { %1469 = vrcp.f32 %v883_v29 }
 0x31e   : > { %1288 = vmatmul.msk.bf16.vlgmr.msrb.gmra.mxu2 %vm850_vm5, %v895_v28 }
 0x323   : > { %v1470_v30 = vpop.eup %1469 }
 0x324   : > { %v893_v31 = vmul.f32 %v1470_v30, %v1462_v10 }
 0x326   : > { %v897_v32 = vpack.c.bf16 %v893_v31, %v893_v31 }
 0x328   : > { %1298 = vmatmul.msk.bf16.vlgmr.msra.gmra.mxu0 %vm850_vm5, %v897_v32 }
 0x34a   : > { %v880_v33 = vpop.xlane.xlu2 %879 }
 0x34b   : > { %1471 = vrcp.f32 %v880_v33 }
 0x351   : > { %v1472_v34 = vpop.eup %1471 }
 0x352   : > { %v892_v35 = vmul.f32 %v1472_v34, %v1464_v20  ;;  %v886_v36 = vpop.xlane.xlu2 %885 }
 0x353   : > { %1473 = vrcp.f32 %v886_v36 }
 0x354   : > { %v896_v37 = vpack.c.bf16 %v892_v35, %v892_v35 }
 0x356   : > { %1293 = vmatmul.msk.bf16.vlgmr.msra.gmra.mxu3 %vm850_vm5, %v896_v37 }
 0x359   : > { %v1474_v38 = vpop.eup %1473 }
 0x35a   : > { %v894_v39 = vmul.f32 %v1474_v38, %v1466_v23 }
 0x35c   : > { %v898_v40 = vpack.c.bf16 %v894_v39, %v894_v39 }
 0x35e   : > { %1303 = vmatmul.msk.bf16.vlgmr.msra.gmra.mxu1 %vm850_vm5, %v898_v40 }
 0x3a1   : > { %v917_v41 = vpop.f32.mrf.mxu2 }
 0x3a2   : > { %v987_v61 = vpack.c.bf16 %v917_v41, %v917_v41 }
 0x3a5   : > { %v961_v42 = vpop.f32.mrf.mxu0 }
 0x3a6   : > { %v989_v43 = vpack.c.bf16 %v961_v42, %v961_v42 }
 0x3a8   : > { %v997_v44 = vunpack.c.l.b16 %v989_v43 }
 0x3a9   : > { %v919_v45 = vpop.f32.mrf.mxu2 }
 0x3aa   : > { %v998_v46 = vpack.c.b16 %v997_v44, %v997_v44 }
 0x3ac   : > { %999 = vrot.lane.b32.xlu2 %v998_v46, %s1792_s24 }
 0x3ad   : > { %v963_v47 = vpop.f32.mrf.mxu0 }
 0x3d9   : > { %v939_v48 = vpop.f32.mrf.mxu3 }
 0x3da   : > { %v988_v49 = vpack.c.bf16 %v939_v48, %v939_v48 }
 0x3db   : > { %v983_v50 = vpop.f32.mrf.mxu1 }
 0x3dc   : > { %v992_v51 = vunpack.c.l.b16 %v988_v49  ;;  %v990_v53 = vpack.c.bf16 %v983_v50, %v983_v50 }
 0x3de   : > { %v993_v52 = vpack.c.b16 %v992_v51, %v992_v51  ;;  %v1002_v55 = vunpack.c.l.b16 %v990_v53 }
 0x3e0   : > { %994 = vrot.lane.b32.xlu1 %v993_v52, %s1793_s11  ;;  %v1003_v57 = vpack.c.b16 %v1002_v55, %v1002_v55 }
 0x3e1   : > { %v941_v54 = vpop.f32.mrf.mxu3 }
 0x3e3   : > { %v985_v56 = vpop.f32.mrf.mxu1 }
 0x3e8   : > { %1004 = vrot.lane.b32.xlu1 %v1003_v57, %s1794_s19 }
 0x406   : > { %v1000_v63 = vpop.permute.xlu2 %999 }
 0x452   : > { %v995_v60 = vpop.permute.xlu1 %994 }
 0x453   : > { %v1008_v62 = vsel %vm772_vm3, %v987_v61, %v995_v60 }
 0x454   : > { %v1010_v1 = vsel %vm850_vm5, %v1008_v62, %v1000_v63 }
 0x45a   : > { %v1005_v0 = vpop.permute.xlu1 %1004 }
 0x45b   : > { %v1013_v2 = vsel %vm1011_vm6, %v1010_v1, %v1005_v0 }
 0x45c   : > { %1312 = vmatmul.msk.bf16.vlgmr.msra.gmra.mxu2 %vm599_vm0, %v1013_v2 }
 0x4df   : > { %v1045_v4 = vpop.f32.mrf.mxu2 }
 0x4e0   : > { %v1046_v5 = vadd.f32 %v1458_v3, %v1045_v4 }
 0x4e2   : > { %1049 = vst.msk [vmem:[%s567_s29] sm:$0xff] %vm599_vm0, %v1046_v5 }
 0x4e3   : > { %1712 = shalt.err (!%p1709_p12)
}
 0x4e4   : > { %1353 = dma.vmem_to_hbm [thread:$0]  (%p1944_p7), %s1065_s27, 128, %s1067_s1, %s1051_s28  }
 0x4e7   : > { %v1047_v6 = vpop.f32.mrf.mxu2 }
 0x4e8 PF: > { %s2198_s14 = sld [smem:[#allocation22_spill]] }
 0x4e9   : > { %s2200_s6 = sld [smem:[#allocation25_spill]] }
 0x4ee   : > { %s1078_s19 = sand.u32 1, %s2198_s14  }
 0x4ef   : > { %p2201_p13 = scmp.ge.s32.totalorder %s2200_s6, 2  ;;  %s1079_s7 = scalar_lea.sflag [#allocation6], %s1078_s19 }
 0x4f1   : > { %p1379_p0 = pnand %p2201_p13, %p1900_p6 }
 0x4f3   : > { %p1380_p3 = pneg %p1379_p0 }
 0x4f5   : > { %1754 = dma.done.wait (%p1380_p3), %s1079_s7, 128  }
 0x4f6   : > { %1756 = vsyncadd (%p1380_p3), %s1079_s7, 4294967168  ;;  %s32_s22 = sadd.s32 1, %s2200_s6   ;;  %s2202_s12 = sld [smem:[#allocation23_spill]] }
 0x4f7   : > { %p29_p5 = scmp.ge.s32.totalorder %s32_s22, 4   ;;  %s2203_s19 = sld [smem:[#allocation29_spill]] }
 0x4f8   : > { %s2204_s8 = sld [smem:[#allocation27_spill]]  ;;  %s2205_s17 = smov %s1763_s18 }
 0x4f9   : > { %s2207_s20 = smov %s1775_s21 }
 0x4fa   :  { %31 = sbr.rel (!%p29_p5) target bundleno = 19 (0x13), region = 153 }
 0x4fc   : > { %s2206_s18 = smov %s2202_s12 }
 0x4fe   : > { %s2208_s21 = smov %s2204_s8 }
 0x4ff   :  { %1085 = vsyncpa [#allocation5], 1 }
 0x500   :  { %1087 = vsyncpa [#allocation5 + $0x1], 1 }
 0x501   :  { %1088 = vsyncpa [#allocation8], 1 }
 0x502   :  { %1090 = vsyncpa [#allocation8 + $0x1], 1 }
 0x503   :  { %1091 = vsyncpa [#allocation11], 1 }
 0x504   :  { %1092 = vsyncpa [#allocation14], 1 }
 0x505   :  { %1093 = vsyncpa [#allocation6], 1 }
 0x506   :  { %1095 = vsyncpa [#allocation6 + $0x1], 1 }

// kernel: tpu_custom_call.1
= control target key start
LH: loop header
LB: loop body
LE: loop exit
PB: predicated region body
PF: predicated region fallthrough
CT: control target
= control target key end

     0   :  { %s2196_s0 = inlined_call_operand.hbm [shape: f32[2,8,32], index: 0, kind: input, shape index: {}]   ;;  %s2197_s1 = inlined_call_operand.hbm [shape: f32[2,16,32], index: 1, kind: input, shape index: {}]   ;;  %s2198_s2 = inlined_call_operand.hbm [shape: f32[2,16,32], index: 2, kind: input, shape index: {}]   ;;  %s2199_s3 = inlined_call_operand.hbm [shape: bf16[32,32], index: 3, kind: input, shape index: {}]   ;;  %s2200_s4 = inlined_call_operand.vmem [shape: f32[1,32], index: 4, kind: input, shape index: {}]   ;;  %s2201_s5 = inlined_call_operand.hbm [shape: bf16[32,32], index: 5, kind: input, shape index: {}]   ;;  %s2202_s6 = inlined_call_operand.vmem [shape: f32[1,32], index: 6, kind: input, shape index: {}]   ;;  %s2203_s7 = inlined_call_operand.hbm [shape: bf16[32,32], index: 7, kind: input, shape index: {}]   ;;  %s2204_s8 = inlined_call_operand.vmem [shape: f32[1,32], index: 8, kind: input, shape index: {}]   ;;  %s2205_s9 = inlined_call_operand.hbm [shape: bf16[32,32], index: 9, kind: input, shape index: {}]   ;;  %s2206_s10 = inlined_call_operand.vmem [shape: f32[1,32], index: 10, kind: input, shape index: {}]   ;;  %s2207_s11 = inlined_call_operand.hbm [shape: f32[2,8,32], index: 11, kind: output, shape index: {}]  }
   0x1   :  { %2221 = sst [smem:[#allocation30_spill]] %s2197_s1 }
   0x2   :  { %2222 = sst [smem:[#allocation31_spill]] %s2199_s3 }
   0x3   :  { %2223 = sst [smem:[#allocation32_spill]] %s2200_s4 }
   0x4   :  { %2224 = sst [smem:[#allocation33_spill]] %s2202_s6 }
   0x5   :  { %2225 = sst [smem:[#allocation34_spill]] %s2203_s7 }
   0x6   :  { %2226 = sst [smem:[#allocation35_spill]] %s2204_s8 }
   0x7   :  { %2227 = sst [smem:[#allocation36_spill]] %s2206_s10 }
   0x8   :  { %2228 = sst [smem:[#allocation37_spill]] %s2207_s11 }
   0x9   :  { %16 = vsyncpa [#allocation5], 0 }
   0xa   :  { %18 = vsyncpa [#allocation5 + $0x1], 0 }
   0xb   :  { %19 = vsyncpa [#allocation8], 0 }
   0xc   :  { %21 = vsyncpa [#allocation8 + $0x1], 0 }
   0xd   :  { %22 = vsyncpa [#allocation11], 0 }
   0xe   :  { %23 = vsyncpa [#allocation14], 0 }
   0xf   :  { %24 = vsyncpa [#allocation6], 0 }
  0x10   :  { %26 = vsyncpa [#allocation6 + $0x1], 0  ;;  %s1899_s17 = smov 0   ;;  %s1901_s18 = smov 0  }
  0x11   :  { %s1903_s19 = smov 0   ;;  %s1905_s20 = smov 0  }
  0x12   :  { %s1907_s21 = smov 0   ;;  %s1909_s22 = smov 0  }
  0x13 LB: > { %2229 = sst [smem:[#allocation22_spill]] %s1803_s17  ;;  %s1930_s23 = sadd.s32 4294967295, %s1823_s22   ;;  %s1823_s22 = sphi %s1909_s22, %s32_s22   ;;  %s1819_s21 = sphi %s1907_s21, %s2266_s21   ;;  %s1815_s20 = sphi %s1905_s20, %s2265_s20   ;;  %s1811_s19 = sphi %s1903_s19, %s2261_s19   ;;  %s1807_s18 = sphi %s1901_s18, %s2264_s18   ;;  %s1803_s17 = sphi %s1899_s17, %s2263_s17  }
  0x14   : > { %2230 = sst [smem:[#allocation23_spill]] %s1811_s19  ;;  %s1254_s24 = sadd.s32 4294967294, %s1823_s22  }
  0x15   : > { %2231 = sst [smem:[#allocation24_spill]] %s1815_s20  ;;  %p66_p0 = scmp.ne.s32.totalorder %s1807_s18, %s1803_s17 }
  0x16   : > { %2232 = sst [smem:[#allocation25_spill]] %s1823_s22  ;;  %p67_p1 = scmp.eq.s32.totalorder %s1930_s23, 0 }
  0x17   : > { %p312_p2 = scmp.eq.s32.totalorder %s1930_s23, 1  ;;  %p318_p3 = scmp.eq.s32.totalorder %s1254_s24, 1 }
  0x18   : > { %p1939_p4 = por %p67_p1, %p66_p0  ;;  %p1255_p5 = scmp.ge.s32.totalorder %s1823_s22, 1 }
  0x19   : > { %p1944_p6 = por %p318_p3, %p66_p0  ;;  %p325_p7 = scmp.lt.s32.totalorder %s1823_s22, 3 }
  0x1a   : > { %s2236_s3 = sld [smem:[#allocation31_spill]]  ;;  %s1825_s12 = smov [#allocation10]  }
  0x1b   : > { %s2234_s26 = scalar_select %p1944_p6, 1, 0 }
  0x1c   : > { %p1952_p8 = pnand %p1255_p5, %p325_p7  ;;  %s338_s13 = sshll.u32 %s1825_s12, 4  ;;  %s339_s13 = int_to_ptr.vmem [resolvable:$true] %s338_s13 }
  0x1d   : > { %2235 = sst [smem:[#allocation26_spill]] %s2234_s26  ;;  %s2208_s27 = smov 64  }
  0x1e   : > { %p1400_p9 = pneg %p1952_p8  ;;  %s2239_s7 = sld [smem:[#allocation34_spill]] }
  0x1f   : > { %s2210_s28 = smov 4   ;;  %s1828_s12 = smov [#allocation13]  }
  0x20   : > { %s336_s29 = sshll.u32 %s2236_s3, 4  ;;  %p1960_p10 = pnand %p1400_p9, %p67_p1  ;;  %s337_s29 = int_to_ptr.hbm [resolvable:$true] %s336_s29 }
  0x21   : > { %s372_s3 = sshll.u32 %s1828_s12, 4  ;;  %s44_s15 = sadd.s32 1, %s1819_s21  ;;  %s373_s3 = int_to_ptr.vmem [resolvable:$true] %s372_s3 }
  0x22   : > { %1403 = dma.hbm_to_vmem [thread:$0]  (!%p1960_p10), %s337_s29, 256, %s339_s13, [#allocation11], %s2208_s27, %s2208_s27, %s2210_s28  }
  0x23   : > { %s53_s16 = sadd.s32 1, %s1811_s19  ;;  %p46_p12 = scmp.ge.s32.totalorder %s44_s15, 2 }
  0x24   : > { %s370_s24 = sshll.u32 %s2239_s7, 4  ;;  %p60_p13 = scmp.ne.s32.totalorder %s1811_s19, %s1807_s18  ;;  %s371_s24 = int_to_ptr.hbm [resolvable:$true] %s370_s24 }
  0x25   : > { %1409 = dma.hbm_to_vmem [thread:$0]  (!%p1960_p10), %s371_s24, 256, %s373_s3, [#allocation14], %s2208_s27, %s2208_s27, %s2210_s28  }
  0x26   : > { %p61_p0 = scmp.eq.s32.totalorder %s1823_s22, 0  ;;  %p1431_p3 = scmp.lt.s32.totalorder %s1823_s22, 2 }
  0x27   : > { %s2268_s15 = smov (%p46_p12, %s44_s15), 0  ;;  %p1988_p7 = por %p312_p2, %p60_p13 }
  0x28   : > { %2240 = sst [smem:[#allocation27_spill]] %s2268_s15  ;;  %p62_p5 = por %p61_p0, %p60_p13 }
  0x29   : > { %s2241_s29 = scalar_select %p1988_p7, 1, 0 }
  0x2a   : > { %s48_s13 = ssub.s32 %s1819_s21, %s2268_s15  ;;  %s1995_s12 = sand.u32 1, %s1811_s19  }
  0x2b   : > { %2242 = sst [smem:[#allocation28_spill]] %s2241_s29  ;;  %p51_p9 = scmp.eq.s32.totalorder %s48_s13, 0 }
  0x2c   : > { %p1997_p11 = pnand %p1431_p3, %p62_p5  ;;  %s426_s24 = sand.u32 1, %s1823_s22  }
  0x2d   : > { %s1263_s27 = sshll.u32 %s1995_s12, 4  ;;  %s1358_s7 = sshll.u32 %s1819_s21, 4 }
  0x2e   : > { %s2004_s28 = scalar_select %p51_p9, %s1811_s19, %s53_s16  }
  0x2f   : > { %s2245_s1 = sld [smem:[#allocation30_spill]]  ;;  %s430_s29 = scalar_lea.vmem [#allocation7], %s1263_s27 }
  0x30   : > { %2244 = sst [smem:[#allocation29_spill]] %s2004_s28  ;;  %s438_s15 = sshll.u32 %s430_s29, 4  ;;  %s439_s15 = int_to_ptr.vmem [resolvable:$true] %s438_s15 }
  0x31   : > { %s2010_s13 = scalar_lea.sflag [#allocation8], %s426_s24  ;;  %s1829_s20 = smov 128  }
  0x32   : > { %s1830_s8 = smov 8   ;;  %s457_s17 = scalar_lea.hbm %s2198_s2, %s1358_s7 }
  0x33   : > { %s452_s26 = scalar_lea.vmem [#allocation9], %s1263_s27  ;;  %s458_s29 = sshll.u32 %s457_s17, 4  ;;  %s459_s29 = int_to_ptr.hbm [resolvable:$true] %s458_s29 }
  0x34   : > { %s353_s19 = sshll.u32 %s2201_s5, 4  ;;  %s1831_s22 = smov [#allocation12]   ;;  %s354_s19 = int_to_ptr.hbm [resolvable:$true] %s353_s19 }
  0x35   : > { %s435_s10 = scalar_lea.hbm %s2245_s1, %s1358_s7  ;;  %s355_s4 = sshll.u32 %s1831_s22, 4  ;;  %s356_s4 = int_to_ptr.vmem [resolvable:$true] %s355_s4 }
  0x36   : > { %s436_s11 = sshll.u32 %s435_s10, 4  ;;  %s460_s10 = sshll.u32 %s452_s26, 4  ;;  %s437_s11 = int_to_ptr.hbm [resolvable:$true] %s436_s11  ;;  %s461_s10 = int_to_ptr.vmem [resolvable:$true] %s460_s10 }
  0x37   : > { %1419 = dma.hbm_to_vmem [thread:$0]  (!%p1997_p11), %s437_s11, 256, %s439_s15, %s2010_s13, %s1829_s20, %s1829_s20, %s1830_s8  }
  0x38   : > { %s387_s15 = sshll.u32 %s2205_s9, 4  ;;  %s2246_s7 = smov 4   ;;  %s388_s15 = int_to_ptr.hbm [resolvable:$true] %s387_s15 }
  0x39   : > { %s2247_s27 = smov 64   ;;  %s1832_s1 = smov [#allocation15]  }
  0x3a   : > { %1406 = dma.hbm_to_vmem [thread:$0]  (!%p1960_p10), %s354_s19, 256, %s356_s4, [#allocation11], %s2247_s27, %s2247_s27, %s2246_s7  }
  0x3b   : > { %s389_s28 = sshll.u32 %s1832_s1, 4  ;;  %s1261_s16 = sshll.u32 %s1995_s12, 3  ;;  %s390_s28 = int_to_ptr.vmem [resolvable:$true] %s389_s28 }
  0x3c   : > { %1412 = dma.hbm_to_vmem [thread:$0]  (!%p1960_p10), %s388_s15, 256, %s390_s28, [#allocation14], %s2247_s27, %s2247_s27, %s2246_s7  }
  0x3d   : > { %s1262_s6 = sshll.u32 %s1819_s21, 3  ;;  %s410_s22 = scalar_lea.vmem [#allocation4], %s1261_s16 }
  0x3e   : > { %s419_s17 = sshll.u32 %s410_s22, 4  ;;  %s415_s11 = scalar_lea.hbm %s2196_s0, %s1262_s6  ;;  %s420_s17 = int_to_ptr.vmem [resolvable:$true] %s419_s17 }
  0x3f   : > { %s417_s4 = sshll.u32 %s415_s11, 4  ;;  %s407_s19 = scalar_lea.sflag [#allocation5], %s1995_s12  ;;  %s418_s4 = int_to_ptr.hbm [resolvable:$true] %s417_s4 }
  0x40   : > { %1416 = dma.hbm_to_vmem [thread:$0]  (!%p1997_p11), %s418_s4, 128, %s420_s17, %s407_s19  }
  0x41   : > { %1422 = dma.hbm_to_vmem [thread:$0]  (!%p1997_p11), %s459_s29, 256, %s461_s10, %s2010_s13, %s1829_s20, %s1829_s20, %s1830_s8  }
  0x42   : > { %472 = sbr.rel (%p1952_p8) target bundleno = 1143 (0x477), region = 64  ;;  %s2054_s14 = sand.u32 (!%p1952_p8), 1, %s1807_s18  }
  0x43   : > { %s1270_s15 = sshll.u32 (!%p1952_p8), %s2054_s14, 3  ;;  %s475_s7 = scalar_lea.sflag (!%p1952_p8), [#allocation5], %s2054_s14 }
  0x44   : > { %s478_s12 = scalar_lea.vmem (!%p1952_p8), [#allocation4], %s1270_s15 }
  0x47   : > { %1782 = dma.done.wait (%p1939_p4), %s475_s7, 128  }
  0x48   : > { %1784 = vsyncadd (%p1939_p4), %s475_s7, 4294967168  ;;  %s484_s8 = sand.u32 1, %s1930_s23   ;;  %s1271_s20 = sshll.u32 %s2054_s14, 4 }
  0x49   : > { %s485_s30 = scalar_lea.sflag [#allocation8], %s484_s8  ;;  %s488_s3 = scalar_lea.vmem [#allocation7], %s1271_s20 }
  0x4a   : > { %1786 = dma.done.wait (%p1939_p4), %s485_s30, 512  }
  0x4b   : > { %1788 = vsyncadd (%p1939_p4), %s485_s30, 4294966784  ;;  %s2070_s13 = scalar_lea.vmem [#allocation9], %s1271_s20 }
  0x4c   : > { %1790 = dma.done.wait (%p67_p1), [#allocation11], 512  }
  0x4d   : > { %1792 = vsyncadd (%p67_p1), [#allocation11], 4294966784 }
  0x4e   : > { %1794 = dma.done.wait (%p67_p1), [#allocation14], 512  }
  0x4f   : > { %1796 = vsyncadd (%p67_p1), [#allocation14], 4294966784  ;;  %v1361_v0 = vld [vmem:[#allocation12 + $0x8] sm:$0xff]  ;;  %v1360_v1 = vld [vmem:[#allocation12] sm:$0xff]  ;;  %vm599_vm0 = vcmask 261120   ;;  %s2248_s10 = sld [smem:[#allocation33_spill]] }
  0x50   : > { %v573_v2 = vld [vmem:[%s488_s3] sm:$0xff]  ;;  %v574_v3 = vld [vmem:[%s488_s3 + $0x8] sm:$0xff]  ;;  %609 = vmatpush.bf16.msra.mxu0 %v1361_v0  ;;  %vm698_vm1 = vcmask 60416   ;;  %s1833_s29 = smov 112   ;;  %s1834_s27 = smov 120   ;;  %vm783_vm2 = vcmask 64512  }
  0x51   : > { %v1373_v4 = vld [vmem:[#allocation10 + $0x8] sm:$0xff]  ;;  %v1372_v5 = vld [vmem:[#allocation10] sm:$0xff]  ;;  %v731_v6 = vld [vmem:[%s478_s12] sm:$0xff]  ;;  %v575_v7 = vpack.c.bf16 %v574_v3, %v573_v2  ;;  %s1835_s1 = smov 104   ;;  %s2249_s6 = sld [smem:[#allocation32_spill]]  ;;  %vm875_vm3 = vcmask 130048  }
  0x52   : > { %763 = vmatpush.bf16.msra.mxu2 %v1373_v4  ;;  %v732_v8 = vpack.c.bf16 %v731_v6, %v731_v6  ;;  %v1363_v10 = vld [vmem:[#allocation13 + $0x8] sm:$0xff]  ;;  %v1362_v24 = vld [vmem:[#allocation13] sm:$0xff]  ;;  %s2250_s26 = sld [smem:[#allocation35_spill]]  ;;  %s1836_s24 = smov 16   ;;  %vm1036_vm4 = vcmask 195584  }
  0x53   : > { %648 = vmatpush.bf16.msra.mxu1 %v1363_v10  ;;  %v576_v25 = vld [vmem:[%s2070_s13] sm:$0xff]  ;;  %v577_v26 = vld [vmem:[%s2070_s13 + $0x8] sm:$0xff]  ;;  %s1837_s11 = smov 24   ;;  %s1838_s4 = smov 8  }
  0x54   : > { %610 = vmatpush.bf16.msra.mxu0 %v1360_v1  ;;  %v578_v27 = vpack.c.bf16 %v577_v26, %v576_v25  ;;  %s2251_s19 = sld [smem:[#allocation24_spill]]  ;;  %s1076_s28 = scalar_lea.sflag [#allocation6], %s2054_s14 }
  0x55   : > { %v1499_v9 = vld [vmem:[%s2248_s10] ss:$0 sm:$0xff]  ;;  %s2252_s20 = sld [smem:[#allocation37_spill]] }
  0x56   : > { %764 = vmatpush.bf16.msra.mxu2 %v1372_v5  ;;  %s2255_s10 = sld [smem:[#allocation36_spill]] }
  0x57   : > { %1286 = vmatmul.msk.bf16.vlgmr.msra.gmra.mxu0 %vm599_vm0, %v575_v7  ;;  %v1500_v17 = vld [vmem:[%s2249_s6] ss:$0 sm:$0xff]  ;;  %649 = vmatpush.bf16.msra.mxu1 %v1362_v24 }
  0x58   : > { %v1501_v45 = vld [vmem:[%s2250_s26] ss:$0 sm:$0xff] }
  0x59   : > { %1304 = vmatmul.msk.bf16.vlgmr.msra.gmra.mxu2 %vm599_vm0, %v732_v8 }
  0x5a   : > { %1295 = vmatmul.msk.bf16.vlgmr.msra.gmra.mxu1 %vm599_vm0, %v578_v27  ;;  %s1355_s7 = sshll.u32 %s2251_s19, 3 }
  0x5b   : > { %s2253_s30 = smov %s2252_s20  ;;  %s1087_s13 = scalar_lea.hbm %s2252_s20, %s1355_s7 }
  0xd4   : > { %v612_v11 = vpop.f32.mrf.mxu0 }
  0xd5   : > { %v613_v12 = vadd.f32 %v1499_v9, %v612_v11 }
  0xd7   : > { %v617_v13 = vpack.c.bf16 %v613_v12, %v613_v12  ;;  %v651_v46 = vpop.f32.mrf.mxu1 }
  0xd8   : > { %v652_v47 = vadd.f32 %v1501_v45, %v651_v46 }
  0xd9   : > { %699 = vst.msk [vmem:[#allocation2] sm:$0xf] %vm698_vm1, %v617_v13  ;;  %666 = vrot.lane.b32.xlu2 %v617_v13, %s1833_s29  ;;  %660 = vrot.lane.b32.xlu1 %v617_v13, %s1834_s27 }
  0xda   : > { %672 = vrot.lane.b32.xlu0 %v617_v13, %s1835_s1  ;;  %v656_v48 = vpack.c.bf16 %v652_v47, %v652_v47 }
  0xdc   : > { %v766_v14 = vpop.f32.mrf.mxu2  ;;  %v614_v15 = vpop.f32.mrf.mxu0  ;;  %707 = vst.msk [vmem:[#allocation3] sm:$0xf] %vm698_vm1, %v656_v48 }
  0xdd   : > { %v615_v16 = vadd.f32 %v1499_v9, %v614_v15  ;;  %v767_v19 = vadd.f32 %v1500_v17, %v766_v14 }
  0xdf   : > { %v618_v18 = vpack.c.bf16 %v615_v16, %v615_v16  ;;  %v770_v21 = vpack.c.bf16 %v767_v19, %v767_v19  ;;  %v653_v49 = vpop.f32.mrf.mxu1 }
  0xe0   : > { %v654_v50 = vadd.f32 %v1501_v45, %v653_v49 }
  0xe1   : > { %700 = vst.msk [vmem:[#allocation2 + $0x4] sm:$0xf] %vm698_vm1, %v618_v18  ;;  %668 = vrot.lane.b32.xlu2 %v618_v18, %s1833_s29  ;;  %662 = vrot.lane.b32.xlu1 %v618_v18, %s1834_s27 }
  0xe2   : > { %674 = vrot.lane.b32.xlu0 %v618_v18, %s1835_s1  ;;  %v657_v51 = vpack.c.bf16 %v654_v50, %v654_v50 }
  0xe4   : > { %v768_v20 = vpop.f32.mrf.mxu2  ;;  %708 = vst.msk [vmem:[#allocation3 + $0x4] sm:$0xf] %vm698_vm1, %v657_v51 }
  0xe8   : > { %v1364_v22 = vld [vmem:[#allocation2] sm:$0xff] }
  0xe9   : > { %774 = vrot.lane.b32.xlu2 %v770_v21, %s1833_s29  ;;  %772 = vrot.lane.b32.xlu1 %v770_v21, %s1834_s27  ;;  %v788_v23 = vsel %vm783_vm2, %v1364_v22, 0 }
  0xea   : > { %776 = vrot.lane.b32.xlu0 %v770_v21, %s1835_s1  ;;  %797 = vmatpush.bf16.xpose.msra.mxu3 %v788_v23 }
  0xeb   : > { %v1368_v52 = vld [vmem:[#allocation3] sm:$0xff] }
  0xf1   : > { %1309 = vmatmul.msk.bf16.vlgmr.msra.gmra.mxu3 %vm783_vm2, %v770_v21 }
  0xf2   : > { %692 = vrot.lane.b32.xlu0 %v656_v48, %s1835_s1  ;;  %940 = vmatpush.bf16.msrb.mxu3 %v1368_v52 }
 0x133   : > { %v667_v28 = vpop.permute.xlu2 %666 }
 0x134   : > { %703 = vst.msk [vmem:[#allocation2 + $0x10] sm:$0xf] %vm698_vm1, %v667_v28 }
 0x13b   : > { %v669_v29 = vpop.permute.xlu2 %668 }
 0x13c   : > { %704 = vst.msk [vmem:[#allocation2 + $0x14] sm:$0xf] %vm698_vm1, %v669_v29 }
 0x143   : > { %v1366_v30 = vld [vmem:[#allocation2 + $0x10] sm:$0xff]  ;;  %v775_v32 = vpop.permute.xlu2 %774 }
 0x144   : > { %v836_v31 = vsel %vm783_vm2, %v1366_v30, 0 }
 0x145   : > { %845 = vmatpush.bf16.xpose.msrb.mxu1 %v836_v31 }
 0x14b   : > { %v661_v33 = vpop.permute.xlu1 %660 }
 0x14c   : > { %701 = vst.msk [vmem:[#allocation2 + $0x8] sm:$0xf] %vm698_vm1, %v661_v33  ;;  %v673_v34 = vpop.permute.xlu0 %672  ;;  %1319 = vmatmul.msk.bf16.vlgmr.msrb.gmra.mxu1 %vm783_vm2, %v775_v32 }
 0x14d   : > { %705 = vst.msk [vmem:[#allocation2 + $0x18] sm:$0xf] %vm698_vm1, %v673_v34 }
 0x153   : > { %v663_v35 = vpop.permute.xlu1 %662 }
 0x154   : > { %702 = vst.msk [vmem:[#allocation2 + $0xc] sm:$0xf] %vm698_vm1, %v663_v35  ;;  %v675_v36 = vpop.permute.xlu0 %674 }
 0x155   : > { %706 = vst.msk [vmem:[#allocation2 + $0x1c] sm:$0xf] %vm698_vm1, %v675_v36 }
 0x15b   : > { %v1365_v37 = vld [vmem:[#allocation2 + $0x8] sm:$0xff]  ;;  %v773_v41 = vpop.permute.xlu1 %772 }
 0x15c   : > { %v1367_v38 = vld [vmem:[#allocation2 + $0x18] sm:$0xff]  ;;  %v812_v39 = vsel %vm783_vm2, %v1365_v37, 0  ;;  %v777_v42 = vpop.permute.xlu0 %776 }
 0x15d   : > { %821 = vmatpush.bf16.xpose.msrb.mxu0 %v812_v39  ;;  %v860_v40 = vsel %vm783_vm2, %v1367_v38, 0 }
 0x15e   : > { %869 = vmatpush.bf16.xpose.msrb.mxu2 %v860_v40 }
 0x164   : > { %1314 = vmatmul.msk.bf16.vlgmr.msrb.gmra.mxu0 %vm783_vm2, %v773_v41  ;;  %v693_v63 = vpop.permute.xlu0 %692 }
 0x165   : > { %1324 = vmatmul.msk.bf16.vlgmr.msrb.gmra.mxu2 %vm783_vm2, %v777_v42  ;;  %713 = vst.msk [vmem:[#allocation3 + $0x18] sm:$0xf] %vm698_vm1, %v693_v63 }
 0x174   : > { %v2116_v43 = vpop.f32.mrf.mxu3 }
 0x175   : > { %v876_v56 = vsel %vm875_vm3, %v2116_v43, -inf }
 0x17c   : > { %v801_v44 = vpop.f32.mrf.mxu3 }
 0x1c9   : > { %v847_v53 = vpop.f32.mrf.mxu1 }
 0x1ca   : > { %v882_v54 = vsel %vm875_vm3, %v847_v53, -inf }
 0x1cb   : > { %883 = vmax.xlane.f32.xlu2 %v882_v54 }
 0x1d1   : > { %v849_v55 = vpop.f32.mrf.mxu1 }
 0x1d3   : > { %877 = vmax.xlane.f32.xlu2 %v876_v56 }
 0x1e1   : > { %v823_v57 = vpop.f32.mrf.mxu0 }
 0x1e2   : > { %v879_v58 = vsel %vm875_vm3, %v823_v57, -inf }
 0x1e3   : > { %880 = vmax.xlane.f32.xlu1 %v879_v58 }
 0x1e8   : > { %v871_v59 = vpop.f32.mrf.mxu2 }
 0x1e9   : > { %v825_v60 = vpop.f32.mrf.mxu0  ;;  %v885_v61 = vsel %vm875_vm3, %v871_v59, -inf }
 0x1ea   : > { %886 = vmax.xlane.f32.xlu0 %v885_v61  ;;  %v1375_v60 = vld [vmem:[#allocation15 + $0x8] sm:$0xff] }
 0x1eb   : > { %1067 = vmatpush.bf16.msra.mxu3 %v1375_v60 }
 0x1f0   : > { %v873_v62 = vpop.f32.mrf.mxu2 }
 0x1f1   : > { %v1374_v62 = vld [vmem:[#allocation15] sm:$0xff] }
 0x1f2   : > { %1068 = vmatpush.bf16.msra.mxu3 %v1374_v62 }
 0x1fc   : > { %694 = vrot.lane.b32.xlu1 %v657_v51, %s1835_s1  ;;  %s1091_s1 = sshll.u32 %s1087_s13, 4  ;;  %s1092_s1 = int_to_ptr.hbm [resolvable:$true] %s1091_s1 }
 0x1fd   : > { %s1743_s16 = sshra.s32 %s1092_s1, 4  ;;  %s1744_s16 = int_to_ptr.hbm [resolvable:$true] %s1743_s16 }
 0x1fe   : > { %682 = vrot.lane.b32.xlu0 %v657_v51, %s1834_s27  ;;  %s1745_s6 = scalar_lea.hbm %s1744_s16, 8  ;;  %p1750_p8 = scmp.lt.s32.totalorder %s1744_s16, %s2253_s30 }
 0x1ff   : > { %p1746_p1 = scmp.ne.s32.totalorder %s1744_s16, %s1745_s6 }
 0x201   : > { %p1747_p2 = pnand %p1746_p1, %p1988_p7 }
 0x203   : > { %p1748_p4 = pneg %p1747_p2 }
 0x204   : > { %686 = vrot.lane.b32.xlu1 %v656_v48, %s1833_s29 }
 0x206   : > { %688 = vrot.lane.b32.xlu0 %v657_v51, %s1833_s29  ;;  %s567_s29 = scalar_lea.vmem [#allocation16], %s1270_s15  ;;  %s1749_s15 = scalar_lea.hbm %s2253_s30, 16 }
 0x207   : > { %p1751_p10 = scmp.lt.s32.totalorder %s1749_s15, %s1745_s6 }
 0x209   : > { %p1752_p11 = por %p1751_p10, %p1750_p8 }
 0x20b   : > { %p1753_p12 = pnand %p1752_p11, %p1748_p4 }
 0x23e   : > { %v884_v0 = vpop.xlane.xlu2 %883 }
 0x23f   : > { %v890_v1 = vsub.f32 %v847_v53, %v884_v0 }
 0x241   : > { %v896_v2 = vmul.f32 1.442695, %v890_v1 }
 0x243   : > { %1503 = vpow2.f32 %v896_v2 }
 0x246   : > { %v878_v21 = vpop.xlane.xlu2 %877 }
 0x247   : > { %v888_v22 = vsub.f32 %v2116_v43, %v878_v21 }
 0x249   : > { %v1504_v3 = vpop.eup %1503  ;;  %v892_v23 = vmul.f32 1.442695, %v888_v22 }
 0x24a   : > { %v906_v4 = vsel %vm875_vm3, %v1504_v3, 0.0 }
 0x24b   : > { %907 = vadd.xlane.f32.xlu0 %v906_v4 }
 0x256   : > { %v881_v5 = vpop.xlane.xlu1 %880 }
 0x257   : > { %v889_v6 = vsub.f32 %v823_v57, %v881_v5 }
 0x259   : > { %v894_v7 = vmul.f32 1.442695, %v889_v6  ;;  %v1502_v6 = vld [vmem:[%s2255_s10] ss:$0 sm:$0xff] }
 0x25b   : > { %1505 = vpow2.f32 %v894_v7 }
 0x25d   : > { %v887_v8 = vpop.xlane.xlu0 %886 }
 0x25e   : > { %v891_v9 = vsub.f32 %v871_v59, %v887_v8 }
 0x260   : > { %v898_v10 = vmul.f32 1.442695, %v891_v9 }
 0x261   : > { %v1506_v11 = vpop.eup %1505 }
 0x262   : > { %1507 = vpow2.f32 %v898_v10  ;;  %v903_v12 = vsel %vm875_vm3, %v1506_v11, 0.0 }
 0x263   : > { %904 = vadd.xlane.f32.xlu1 %v903_v12  ;;  %1509 = vpow2.f32 %v892_v23 }
 0x268   : > { %v1508_v13 = vpop.eup %1507 }
 0x269   : > { %v909_v14 = vsel %vm875_vm3, %v1508_v13, 0.0  ;;  %v1510_v24 = vpop.eup %1509 }
 0x26a   : > { %910 = vadd.xlane.f32.xlu2 %v909_v14  ;;  %v900_v25 = vsel %vm875_vm3, %v1510_v24, 0.0 }
 0x26e   : > { %v695_v15 = vpop.permute.xlu1 %694 }
 0x26f   : > { %714 = vst.msk [vmem:[#allocation3 + $0x1c] sm:$0xf] %vm698_vm1, %v695_v15 }
 0x270   : > { %v683_v16 = vpop.permute.xlu0 %682 }
 0x271   : > { %710 = vst.msk [vmem:[#allocation3 + $0xc] sm:$0xf] %vm698_vm1, %v683_v16 }
 0x276   : > { %v687_v17 = vpop.permute.xlu1 %686  ;;  %v1371_v18 = vld [vmem:[#allocation3 + $0x18] sm:$0xff] }
 0x277   : > { %711 = vst.msk [vmem:[#allocation3 + $0x10] sm:$0xf] %vm698_vm1, %v687_v17  ;;  %1006 = vmatpush.bf16.msra.mxu2 %v1371_v18 }
 0x278   : > { %v689_v19 = vpop.permute.xlu0 %688 }
 0x279   : > { %712 = vst.msk [vmem:[#allocation3 + $0x14] sm:$0xf] %vm698_vm1, %v689_v19 }
 0x280   : > { %v1370_v20 = vld [vmem:[#allocation3 + $0x10] sm:$0xff] }
 0x281   : > { %984 = vmatpush.bf16.msra.mxu1 %v1370_v20 }
 0x282   : > { %680 = vrot.lane.b32.xlu2 %v656_v48, %s1834_s27  ;;  %s1089_s27 = sshll.u32 %s567_s29, 4  ;;  %s1090_s27 = int_to_ptr.vmem [resolvable:$true] %s1089_s27 }
 0x2ab   : > { %901 = vadd.xlane.f32.xlu2 %v900_v25 }
 0x2be   : > { %v908_v26 = vpop.xlane.xlu0 %907 }
 0x2bf   : > { %1511 = vrcp.f32 %v908_v26 }
 0x2c5   : > { %v1512_v27 = vpop.eup %1511 }
 0x2c6   : > { %v918_v28 = vmul.f32 %v1512_v27, %v1504_v3 }
 0x2c8   : > { %v922_v29 = vpack.c.bf16 %v918_v28, %v918_v28 }
 0x2ca   : > { %1339 = vmatmul.msk.bf16.vlgmr.msra.gmra.mxu1 %vm875_vm3, %v922_v29 }
 0x2d6   : > { %v905_v31 = vpop.xlane.xlu1 %904 }
 0x2dd   : > { %v911_v30 = vpop.xlane.xlu2 %910 }
 0x2de   : > { %1513 = vrcp.f32 %v911_v30 }
 0x2df   : > { %1515 = vrcp.f32 %v905_v31 }
 0x2e4   : > { %v1514_v32 = vpop.eup %1513 }
 0x2e5   : > { %v919_v33 = vmul.f32 %v1514_v32, %v1508_v13  ;;  %v681_v34 = vpop.permute.xlu2 %680  ;;  %v1516_v36 = vpop.eup %1515 }
 0x2e6   : > { %709 = vst.msk [vmem:[#allocation3 + $0x8] sm:$0xf] %vm698_vm1, %v681_v34  ;;  %v917_v37 = vmul.f32 %v1516_v36, %v1506_v11 }
 0x2e7   : > { %v923_v35 = vpack.c.bf16 %v919_v33, %v919_v33 }
 0x2e8   : > { %v921_v39 = vpack.c.bf16 %v917_v37, %v917_v37 }
 0x2e9   : > { %1344 = vmatmul.msk.bf16.vlgmr.msra.gmra.mxu2 %vm875_vm3, %v923_v35 }
 0x2ed   : > { %v1369_v38 = vld [vmem:[#allocation3 + $0x8] sm:$0xff] }
 0x2ee   : > { %962 = vmatpush.bf16.msra.mxu0 %v1369_v38 }
 0x2f1   : > { %1334 = vmatmul.msk.bf16.vlgmr.msra.gmra.mxu0 %vm875_vm3, %v921_v39 }
 0x31e   : > { %v902_v40 = vpop.xlane.xlu2 %901 }
 0x31f   : > { %1517 = vrcp.f32 %v902_v40 }
 0x325   : > { %v1518_v41 = vpop.eup %1517 }
 0x326   : > { %v916_v42 = vmul.f32 %v1518_v41, %v1510_v24 }
 0x328   : > { %v920_v43 = vpack.c.bf16 %v916_v42, %v916_v42 }
 0x32a   : > { %1329 = vmatmul.msk.bf16.vlgmr.msrb.gmra.mxu3 %vm875_vm3, %v920_v43 }
 0x347   : > { %v986_v44 = vpop.f32.mrf.mxu1 }
 0x348   : > { %v1014_v45 = vpack.c.bf16 %v986_v44, %v986_v44 }
 0x34a   : > { %v1022_v46 = vunpack.c.l.b16 %v1014_v45 }
 0x34c   : > { %v1023_v47 = vpack.c.b16 %v1022_v46, %v1022_v46 }
 0x34e   : > { %1024 = vrot.lane.b32.xlu0 %v1023_v47, %s1836_s24 }
 0x34f   : > { %v988_v48 = vpop.f32.mrf.mxu1 }
 0x36c   : > { %v1008_v49 = vpop.f32.mrf.mxu2 }
 0x36d   : > { %v1015_v50 = vpack.c.bf16 %v1008_v49, %v1008_v49 }
 0x36e   : > { %v964_v52 = vpop.f32.mrf.mxu0 }
 0x36f   : > { %v1027_v51 = vunpack.c.l.b16 %v1015_v50  ;;  %v1013_v53 = vpack.c.bf16 %v964_v52, %v964_v52 }
 0x371   : > { %v1028_v54 = vpack.c.b16 %v1027_v51, %v1027_v51  ;;  %v1017_v55 = vunpack.c.l.b16 %v1013_v53 }
 0x373   : > { %1029 = vrot.lane.b32.xlu2 %v1028_v54, %s1837_s11  ;;  %v1018_v56 = vpack.c.b16 %v1017_v55, %v1017_v55 }
 0x374   : > { %v1010_v57 = vpop.f32.mrf.mxu2 }
 0x375   : > { %1019 = vrot.lane.b32.xlu1 %v1018_v56, %s1838_s4 }
 0x376   : > { %v966_v58 = vpop.f32.mrf.mxu0 }
 0x3ad   : > { %v942_v59 = vpop.f32.mrf.mxu3 }
 0x3ae   : > { %v1012_v63 = vpack.c.bf16 %v942_v59, %v942_v59 }
 0x3b5   : > { %v944_v61 = vpop.f32.mrf.mxu3 }
 0x3c0   : > { %v1025_v1 = vpop.permute.xlu0 %1024 }
 0x3cd   : > { %v1030_v3 = vpop.permute.xlu2 %1029 }
 0x3e7   : > { %v1020_v0 = vpop.permute.xlu1 %1019 }
 0x3e8   : > { %v1033_v2 = vsel %vm783_vm2, %v1012_v63, %v1020_v0 }
 0x3e9   : > { %v1035_v4 = vsel %vm875_vm3, %v1033_v2, %v1025_v1 }
 0x3ea   : > { %v1038_v5 = vsel %vm1036_vm4, %v1035_v4, %v1030_v3 }
 0x3eb   : > { %1353 = vmatmul.msk.bf16.vlgmr.msra.gmra.mxu3 %vm599_vm0, %v1038_v5 }
 0x46e   : > { %v1070_v7 = vpop.f32.mrf.mxu3 }
 0x46f   : > { %v1071_v8 = vadd.f32 %v1502_v6, %v1070_v7 }
 0x471   : > { %1074 = vst.msk [vmem:[%s567_s29] sm:$0xff] %vm599_vm0, %v1071_v8 }
 0x472   : > { %1756 = shalt.err (!%p1753_p12)
}
 0x473   : > { %1398 = dma.vmem_to_hbm [thread:$0]  (%p1988_p7), %s1090_s27, 128, %s1092_s1, %s1076_s28  }
 0x476   : > { %v1072_v9 = vpop.f32.mrf.mxu3 }
 0x477 PF: > { %s2256_s14 = sld [smem:[#allocation22_spill]] }
 0x478   : > { %s2258_s4 = sld [smem:[#allocation25_spill]] }
 0x47d   : > { %s1103_s19 = sand.u32 1, %s2256_s14  }
 0x47e   : > { %p2259_p13 = scmp.ge.s32.totalorder %s2258_s4, 2  ;;  %s1104_s7 = scalar_lea.sflag [#allocation6], %s1103_s19 }
 0x480   : > { %p1424_p0 = pnand %p2259_p13, %p1944_p6 }
 0x482   : > { %p1425_p3 = pneg %p1424_p0 }
 0x484   : > { %1798 = dma.done.wait (%p1425_p3), %s1104_s7, 128  }
 0x485   : > { %1800 = vsyncadd (%p1425_p3), %s1104_s7, 4294967168  ;;  %s32_s22 = sadd.s32 1, %s2258_s4   ;;  %s2260_s12 = sld [smem:[#allocation23_spill]] }
 0x486   : > { %p29_p5 = scmp.ge.s32.totalorder %s32_s22, 4   ;;  %s2261_s19 = sld [smem:[#allocation29_spill]] }
 0x487   : > { %s2262_s8 = sld [smem:[#allocation27_spill]]  ;;  %s2263_s17 = smov %s1807_s18 }
 0x488   : > { %s2265_s20 = smov %s1819_s21 }
 0x489   :  { %31 = sbr.rel (!%p29_p5) target bundleno = 19 (0x13), region = 153 }
 0x48b   : > { %s2264_s18 = smov %s2260_s12 }
 0x48d   : > { %s2266_s21 = smov %s2262_s8 }
 0x48e   :  { %1110 = vsyncpa [#allocation5], 1 }
 0x48f   :  { %1112 = vsyncpa [#allocation5 + $0x1], 1 }
 0x490   :  { %1113 = vsyncpa [#allocation8], 1 }
 0x491   :  { %1115 = vsyncpa [#allocation8 + $0x1], 1 }
 0x492   :  { %1116 = vsyncpa [#allocation11], 1 }
 0x493   :  { %1117 = vsyncpa [#allocation14], 1 }
 0x494   :  { %1118 = vsyncpa [#allocation6], 1 }
 0x495   :  { %1120 = vsyncpa [#allocation6 + $0x1], 1 }

</bundles_post_ra>
